<compile_context>
chip_gen: v6e
topology: v6e:2x2x1
jax: 0.10.0
libtpu: 0.0.40
codegen_flags: <defaults>
</compile_context>

<pallas_src>
import jax
import jax.numpy as jnp
from jax.experimental import pallas as pl
from jax.experimental.pallas import tpu as pltpu


# ---------------------------------------------------------------------------
# Kernel
# ---------------------------------------------------------------------------
def _silu(h):
    # h * sigmoid(h); exp and the approximate reciprocal both execute on the
    # EUP slot, so the VPU only sees one add and two muls.  For very negative
    # h, exp(-h) -> inf -> recip -> 0 -> silu -> 0, the correct limit.
    return h * pl.reciprocal(1.0 + jnp.exp(-h), approx=True)


def edge_kv_radial_kernel(x_ref, w1_ref, w2_ref, w3_ref, k_ref, v_ref):
    """Fused fc_k / fc_v forward on one (tile_n, d_in) block of edges.

    Packed weights (f32, bias folded in as the LAST row of each array):
      w1: (d_in + 1,  2*h1)      columns [fc_k | fc_v], shared input x
      w2: (2*h1 + 1,  2*h2)      block-diagonal [wk2 0 ; 0 wv2]
      w3: (2*h2 + 1,  dk + dv)   block-diagonal [wk3 0 ; 0 wv3]
    """
    d_in = x_ref.shape[1]
    h1x2 = w2_ref.shape[0] - 1          # 2*h1
    h2x2 = w3_ref.shape[0] - 1          # 2*h2
    dk = k_ref.shape[1]

    # RadialMLP.forward starts with x.float(); also lets callers pass bf16 x.
    x = x_ref[...].astype(jnp.float32)                      # (tile_n, d_in)
    w1 = w1_ref[...]
    w2 = w2_ref[...]
    w3 = w3_ref[...]

    h = jnp.dot(x, w1[:d_in, :], preferred_element_type=jnp.float32) + w1[d_in:, :]
    h = _silu(h)                                             # (tile_n, 2*h1)
    h = jnp.dot(h, w2[:h1x2, :], preferred_element_type=jnp.float32) + w2[h1x2:, :]
    h = _silu(h)                                             # (tile_n, 2*h2)
    y = jnp.dot(h, w3[:h2x2, :], preferred_element_type=jnp.float32) + w3[h2x2:, :]

    # Split [k | v] and store directly to the lane-dense output tiles --
    # no transpose anywhere (dk = 128 in the demo, so the split is granule
    # aligned; a non-multiple-of-128 dk still compiles, just with a shuffle).
    k_ref[...] = y[:, :dk].astype(k_ref.dtype)
    v_ref[...] = y[:, dk:].astype(v_ref.dtype)


# ---------------------------------------------------------------------------
# Host-side parameter packing
# ---------------------------------------------------------------------------
def _norm_params(params):
    return [(jnp.asarray(w, jnp.float32), jnp.asarray(b, jnp.float32).reshape(-1))
            for (w, b) in params]


def _pack_shared_input(wk, bk, wv, bv):
    # First layer: both MLPs read the same x -> stack along the output dim.
    (ok, ik), (ov, iv) = wk.shape, wv.shape
    assert ik == iv
    w = jnp.zeros((ik + 1, ok + ov), jnp.float32)
    w = w.at[:ik, :ok].set(wk.T)
    w = w.at[:ik, ok:].set(wv.T)
    w = w.at[ik, :ok].set(bk)
    w = w.at[ik, ok:].set(bv)
    return w


def _pack_block_diag(wk, bk, wv, bv):
    # Later layers: independent k / v hidden states -> block-diagonal fuse.
    (ok, ik), (ov, iv) = wk.shape, wv.shape
    w = jnp.zeros((ik + iv + 1, ok + ov), jnp.float32)
    w = w.at[:ik, :ok].set(wk.T)
    w = w.at[ik:ik + iv, ok:].set(wv.T)
    w = w.at[ik + iv, :ok].set(bk)
    w = w.at[ik + iv, ok:].set(bv)
    return w


def _round_up(x, m):
    return ((x + m - 1) // m) * m


# ---------------------------------------------------------------------------
# Host-side wrapper
# ---------------------------------------------------------------------------
def edge_kv_radial_weights(edge_radial_emb, params_k, params_v, *,
                           tile_n=1024, out_dtype=jnp.float32):
    """Fused fc_k / fc_v forward.

    edge_radial_emb: (N, num_basis_radial)
    params_*: list of 3 (W (out,in), b (out,)) tuples (PyTorch Linear layout).
    Returns (k_weights (N, dk), v_weights (N, dv)) in `out_dtype`
    (pass jnp.bfloat16 on v5e if the downstream tensor product tolerates it).
    """
    n, d_in = edge_radial_emb.shape
    pk, pv = _norm_params(params_k), _norm_params(params_v)
    h1, h2 = pk[0][0].shape[0], pk[1][0].shape[0]
    dk, dv = pk[2][0].shape[0], pv[2][0].shape[0]

    w1c = _pack_shared_input(pk[0][0], pk[0][1], pv[0][0], pv[0][1])   # (d_in+1, 2h1)
    w2c = _pack_block_diag(pk[1][0], pk[1][1], pv[1][0], pv[1][1])     # (2h1+1, 2h2)
    w3c = _pack_block_diag(pk[2][0], pk[2][1], pv[2][0], pv[2][1])     # (2h2+1, dk+dv)

    # --- tiling ------------------------------------------------------------
    # Cap tile_n at 2048: double-buffered in/out tiles plus intermediates stay
    # well under the 32 MiB default scoped VMEM even on v7x.
    tile_cap = max(128, (min(int(tile_n), 2048) // 128) * 128)
    n128 = _round_up(n, 128)
    if n128 <= tile_cap:
        # Would be a single grid block: split in two when possible so both
        # v7x TensorCores get work via the "parallel" grid axis.
        tile = _round_up(n128 // 2, 128) if n128 >= 256 else n128
    else:
        tile = tile_cap
    n_pad = _round_up(n128, tile)

    x = edge_radial_emb
    if n_pad != n:
        # Zero padding rows flow through the MLP to finite values and are
        # sliced off below (never NaN/inf).
        x = jnp.pad(x, ((0, n_pad - n), (0, 0)))

    grid = (n_pad // tile,)
    const_map = lambda i: (0, 0)

    flops = 2 * n_pad * (d_in * 2 * h1 + (2 * h1) * (2 * h2) + (2 * h2) * (dk + dv))
    transcendentals = 2 * n_pad * 2 * (h1 + h2)              # exp + vrcp per SiLU
    param_bytes = 4 * int(w1c.size + w2c.size + w3c.size)
    bytes_accessed = int(n_pad * d_in * x.dtype.itemsize
                         + n_pad * (dk + dv) * jnp.dtype(out_dtype).itemsize
                         + param_bytes)

    k_full, v_full = pl.pallas_call(
        edge_kv_radial_kernel,
        out_shape=(jax.ShapeDtypeStruct((n_pad, dk), out_dtype),
                   jax.ShapeDtypeStruct((n_pad, dv), out_dtype)),
        grid_spec=pltpu.PrefetchScalarGridSpec(
            num_scalar_prefetch=0,
            grid=grid,
            in_specs=[
                pl.BlockSpec((tile, d_in), lambda i: (i, 0)),
                pl.BlockSpec(w1c.shape, const_map),
                pl.BlockSpec(w2c.shape, const_map),
                pl.BlockSpec(w3c.shape, const_map),
            ],
            out_specs=[
                pl.BlockSpec((tile, dk), lambda i: (i, 0)),
                pl.BlockSpec((tile, dv), lambda i: (i, 0)),
            ],
        ),
        compiler_params=pltpu.CompilerParams(
            dimension_semantics=("parallel",),
        ),
        cost_estimate=pl.CostEstimate(
            flops=int(flops),
            transcendentals=int(transcendentals),
            bytes_accessed=bytes_accessed,
        ),
    )(x, w1c, w2c, w3c)

    if n_pad != n:
        k_full = k_full[:n]
        v_full = v_full[:n]
    return k_full, v_full


def edge_key_value_forward(node_features_src, edge_sh, edge_radial_emb,
                           params_k, params_v, *, tile_n=1024,
                           out_dtype=jnp.float32):
    """EdgeKeyValueNetwork.forward (radial-MLP part fused in Pallas)."""
    k_weights, v_weights = edge_kv_radial_weights(
        edge_radial_emb, params_k, params_v, tile_n=tile_n, out_dtype=out_dtype)
    # TODO(synk): apply o3.FullyConnectedTensorProduct(node_features_src, edge_sh,
    # weight=k/v_weights) -- requires e3nn Clebsch-Gordan tables; not implemented.
    del node_features_src, edge_sh
    return k_weights, v_weights


# ---------------------------------------------------------------------------
# Parameter init + pure-JAX reference
# ---------------------------------------------------------------------------
def init_params(key, input_dim, hidden_dims, output_dim):
    """PyTorch-style Linear init; weights stored (out_features, in_features)."""
    dims = [input_dim] + list(hidden_dims) + [output_dim]
    params = []
    for i in range(len(dims) - 1):
        key, kw, kb = jax.random.split(key, 3)
        fan_in, fan_out = dims[i], dims[i + 1]
        bound = 1.0 / jnp.sqrt(fan_in)
        w = jax.random.uniform(kw, (fan_out, fan_in), jnp.float32, -bound, bound)
        b = jax.random.uniform(kb, (fan_out,), jnp.float32, -bound, bound)
        params.append((w, b))
    return params


def radial_mlp_ref(x, params):
    h = x.astype(jnp.float32)
    for i, (w, b) in enumerate(params):
        h = h @ w.T + b.reshape(1, -1)
        if i < len(params) - 1:
            h = jax.nn.silu(h)
    return h


# ---------------------------------------------------------------------------
# Demo / self-check
# ---------------------------------------------------------------------------
if __name__ == "__main__":
    num_basis_radial = 8
    radial_mlp_hidden = [32, 64]
    weight_numel_k = 128      # stand-in for tp_k.weight_numel
    weight_numel_v = 160      # stand-in for tp_v.weight_numel
    num_edges = 500           # non-multiple of 128: exercises padding; 2 grid blocks
    node_dim = 32             # dim(irreps_node_input)  (only used by the TODO TP)
    sh_dim = 16               # dim(irreps_sh)          (only used by the TODO TP)

    key = jax.random.PRNGKey(0)
    key, kx, kn, ks, kk, kv = jax.random.split(key, 6)
    edge_radial_emb = jax.random.normal(kx, (num_edges, num_basis_radial), jnp.float32)
    node_features_src = jax.random.normal(kn, (num_edges, node_dim), jnp.float32)
    edge_sh = jax.random.normal(ks, (num_edges, sh_dim), jnp.float32)

    params_k = init_params(kk, num_basis_radial, radial_mlp_hidden, weight_numel_k)
    params_v = init_params(kv, num_basis_radial, radial_mlp_hidden, weight_numel_v)

    k_w, v_w = edge_key_value_forward(node_features_src, edge_sh, edge_radial_emb,
                                      params_k, params_v)
    k_w = jax.block_until_ready(k_w)
    v_w = jax.block_until_ready(v_w)

    k_ref = radial_mlp_ref(edge_radial_emb, params_k)
    v_ref = radial_mlp_ref(edge_radial_emb, params_v)

    assert k_w.shape == (num_edges, weight_numel_k)
    assert v_w.shape == (num_edges, weight_numel_v)
    # tolerance accounts for the approximate (EUP vrcp) reciprocal in the SiLU
    assert jnp.allclose(k_w, k_ref, atol=5e-3, rtol=5e-3), "fc_k mismatch vs reference"
    assert jnp.allclose(v_w, v_ref, atol=5e-3, rtol=5e-3), "fc_v mismatch vs reference"

    print("KERNEL_OK")
</pallas_src>

<mosaic_0001>
module attributes {stable_mosaic.version = 11 : i64} {
  func.func @edge_kv_radial_kernel(%arg0: i32, %arg1: memref<256x8xf32, #tpu.memory_space<vmem>>, %arg2: memref<9x64xf32, #tpu.memory_space<vmem>>, %arg3: memref<65x128xf32, #tpu.memory_space<vmem>>, %arg4: memref<129x288xf32, #tpu.memory_space<vmem>>, %arg5: memref<256x128xf32, #tpu.memory_space<vmem>>, %arg6: memref<256x160xf32, #tpu.memory_space<vmem>>) attributes {dimension_semantics = [#tpu.dimension_semantics<parallel>], iteration_bounds = array<i64: 2>, scalar_prefetch = 0 : i64, scratch_operands = 0 : i64, tpu.core_type = #tpu.core_type<tc>, window_params = [{transform_indices = @transform_0, window_bounds = array<i64: 256, 8>}, {pipeline_mode = #tpu.pipeline_mode<synchronous>, transform_indices = @transform_1, window_bounds = array<i64: 9, 64>}, {pipeline_mode = #tpu.pipeline_mode<synchronous>, transform_indices = @transform_2, window_bounds = array<i64: 65, 128>}, {pipeline_mode = #tpu.pipeline_mode<synchronous>, transform_indices = @transform_3, window_bounds = array<i64: 129, 288>}, {transform_indices = @transform_4, window_bounds = array<i64: 256, 128>}, {transform_indices = @transform_5, window_bounds = array<i64: 256, 160>}]} {
    %c0 = arith.constant 0 : index
    %c0_0 = arith.constant 0 : index
    %0 = vector.load %arg1[%c0, %c0_0] : memref<256x8xf32, #tpu.memory_space<vmem>>, vector<256x8xf32>
    %c0_1 = arith.constant 0 : index
    %c0_2 = arith.constant 0 : index
    %1 = vector.load %arg2[%c0_1, %c0_2] : memref<9x64xf32, #tpu.memory_space<vmem>>, vector<9x64xf32>
    %c0_3 = arith.constant 0 : index
    %c0_4 = arith.constant 0 : index
    %2 = vector.load %arg3[%c0_3, %c0_4] : memref<65x128xf32, #tpu.memory_space<vmem>>, vector<65x128xf32>
    %c0_5 = arith.constant 0 : index
    %c0_6 = arith.constant 0 : index
    %3 = vector.load %arg4[%c0_5, %c0_6] : memref<129x288xf32, #tpu.memory_space<vmem>>, vector<129x288xf32>
    %4 = vector.extract_strided_slice %1 {offsets = [0, 0], sizes = [8, 64], strides = [1, 1]} : vector<9x64xf32> to vector<8x64xf32>
    %cst = arith.constant dense<0.000000e+00> : vector<256x64xf32>
    %5 = tpu.matmul %0, %4, %cst {dimension_numbers = #tpu.dot_dimension_numbers<[1], [0], [0], [1], [0, 0, 1, 1], [], []>} : vector<256x8xf32>, vector<8x64xf32>, vector<256x64xf32> -> vector<256x64xf32>
    %6 = vector.extract_strided_slice %1 {offsets = [8, 0], sizes = [1, 64], strides = [1, 1]} : vector<9x64xf32> to vector<1x64xf32>
    %7 = vector.broadcast %6 : vector<1x64xf32> to vector<256x64xf32>
    %8 = arith.addf %5, %7 : vector<256x64xf32>
    %cst_7 = arith.constant 0.000000e+00 : f32
    %9 = vector.broadcast %cst_7 : f32 to vector<256x64xf32>
    %10 = arith.subf %9, %8 : vector<256x64xf32>
    %11 = math.exp %10 : vector<256x64xf32>
    %cst_8 = arith.constant 1.000000e+00 : f32
    %12 = vector.broadcast %cst_8 : f32 to vector<256x64xf32>
    %13 = arith.addf %12, %11 : vector<256x64xf32>
    %14 = tpu.reciprocal %13 {approx = true} : vector<256x64xf32> -> vector<256x64xf32>
    %15 = arith.mulf %8, %14 : vector<256x64xf32>
    %16 = vector.extract_strided_slice %2 {offsets = [0, 0], sizes = [64, 128], strides = [1, 1]} : vector<65x128xf32> to vector<64x128xf32>
    %cst_9 = arith.constant dense<0.000000e+00> : vector<256x128xf32>
    %17 = tpu.matmul %15, %16, %cst_9 {dimension_numbers = #tpu.dot_dimension_numbers<[1], [0], [0], [1], [0, 0, 1, 1], [], []>} : vector<256x64xf32>, vector<64x128xf32>, vector<256x128xf32> -> vector<256x128xf32>
    %18 = vector.extract_strided_slice %2 {offsets = [64, 0], sizes = [1, 128], strides = [1, 1]} : vector<65x128xf32> to vector<1x128xf32>
    %19 = vector.broadcast %18 : vector<1x128xf32> to vector<256x128xf32>
    %20 = arith.addf %17, %19 : vector<256x128xf32>
    %cst_10 = arith.constant 0.000000e+00 : f32
    %21 = vector.broadcast %cst_10 : f32 to vector<256x128xf32>
    %22 = arith.subf %21, %20 : vector<256x128xf32>
    %23 = math.exp %22 : vector<256x128xf32>
    %cst_11 = arith.constant 1.000000e+00 : f32
    %24 = vector.broadcast %cst_11 : f32 to vector<256x128xf32>
    %25 = arith.addf %24, %23 : vector<256x128xf32>
    %26 = tpu.reciprocal %25 {approx = true} : vector<256x128xf32> -> vector<256x128xf32>
    %27 = arith.mulf %20, %26 : vector<256x128xf32>
    %28 = vector.extract_strided_slice %3 {offsets = [0, 0], sizes = [128, 288], strides = [1, 1]} : vector<129x288xf32> to vector<128x288xf32>
    %cst_12 = arith.constant dense<0.000000e+00> : vector<256x288xf32>
    %29 = tpu.matmul %27, %28, %cst_12 {dimension_numbers = #tpu.dot_dimension_numbers<[1], [0], [0], [1], [0, 0, 1, 1], [], []>} : vector<256x128xf32>, vector<128x288xf32>, vector<256x288xf32> -> vector<256x288xf32>
    %30 = vector.extract_strided_slice %3 {offsets = [128, 0], sizes = [1, 288], strides = [1, 1]} : vector<129x288xf32> to vector<1x288xf32>
    %31 = vector.broadcast %30 : vector<1x288xf32> to vector<256x288xf32>
    %32 = arith.addf %29, %31 : vector<256x288xf32>
    %33 = vector.extract_strided_slice %32 {offsets = [0, 0], sizes = [256, 128], strides = [1, 1]} : vector<256x288xf32> to vector<256x128xf32>
    %c0_13 = arith.constant 0 : index
    %c0_14 = arith.constant 0 : index
    %34 = vector.load %arg5[%c0_13, %c0_14] : memref<256x128xf32, #tpu.memory_space<vmem>>, vector<256x128xf32>
    tpu.vector_store %arg5[%c0_13, %c0_14], %33 {strides = array<i32>} : memref<256x128xf32, #tpu.memory_space<vmem>>, vector<256x128xf32>,
    %35 = vector.extract_strided_slice %32 {offsets = [0, 128], sizes = [256, 160], strides = [1, 1]} : vector<256x288xf32> to vector<256x160xf32>
    %c0_15 = arith.constant 0 : index
    %c0_16 = arith.constant 0 : index
    %36 = vector.load %arg6[%c0_15, %c0_16] : memref<256x160xf32, #tpu.memory_space<vmem>>, vector<256x160xf32>
    tpu.vector_store %arg6[%c0_15, %c0_16], %35 {strides = array<i32>} : memref<256x160xf32, #tpu.memory_space<vmem>>, vector<256x160xf32>,
    return
  }
  func.func @transform_0(%arg0: i32) -> (i32, i32) {
    %c0_i32 = arith.constant 0 : i32
    %c0_i32_0 = arith.constant 0 : i32
    return %arg0, %c0_i32 : i32, i32
  }
  func.func @transform_1(%arg0: i32) -> (i32, i32) {
    %c0_i32 = arith.constant 0 : i32
    %c0_i32_0 = arith.constant 0 : i32
    %c0_i32_1 = arith.constant 0 : i32
    return %c0_i32, %c0_i32_0 : i32, i32
  }
  func.func @transform_2(%arg0: i32) -> (i32, i32) {
    %c0_i32 = arith.constant 0 : i32
    %c0_i32_0 = arith.constant 0 : i32
    %c0_i32_1 = arith.constant 0 : i32
    return %c0_i32, %c0_i32_0 : i32, i32
  }
  func.func @transform_3(%arg0: i32) -> (i32, i32) {
    %c0_i32 = arith.constant 0 : i32
    %c0_i32_0 = arith.constant 0 : i32
    %c0_i32_1 = arith.constant 0 : i32
    return %c0_i32, %c0_i32_0 : i32, i32
  }
  func.func @transform_4(%arg0: i32) -> (i32, i32) {
    %c0_i32 = arith.constant 0 : i32
    %c0_i32_0 = arith.constant 0 : i32
    return %arg0, %c0_i32 : i32, i32
  }
  func.func @transform_5(%arg0: i32) -> (i32, i32) {
    %c0_i32 = arith.constant 0 : i32
    %c0_i32_0 = arith.constant 0 : i32
    return %arg0, %c0_i32 : i32, i32
  }
}

</mosaic_0001>

<bundles_post_ra>
// kernel: tpu_custom_call.1
= control target key start
LH: loop header
LB: loop body
LE: loop exit
PB: predicated region body
PF: predicated region fallthrough
CT: control target
= control target key end

     0   :  { %11 = vsyncpa [#allocation3], 0  ;;  %s3940_s0 = inlined_call_operand.vmem [shape: f32[512,8], index: 0, kind: input, shape index: {}]   ;;  %s3941_s1 = inlined_call_operand.vmem [shape: f32[9,64], index: 1, kind: input, shape index: {}]   ;;  %s3942_s2 = inlined_call_operand.vmem [shape: f32[65,128], index: 2, kind: input, shape index: {}]   ;;  %s3943_s3 = inlined_call_operand.vmem [shape: f32[129,288], index: 3, kind: input, shape index: {}]   ;;  %s3944_s4 = inlined_call_operand.hbm [shape: f32[512,128], index: 4, kind: output, shape index: {0}]   ;;  %s3945_s5 = inlined_call_operand.vmem [shape: f32[512,160], index: 5, kind: output, shape index: {1}]  }
   0x1   :  { %13 = vsyncpa [#allocation3 + $0x1], 0  ;;  %s2872_s18 = smov 0   ;;  %s2874_s19 = smov 0  }
   0x2   :  { %s2876_s20 = smov 0   ;;  %s2878_s21 = smov 0  }
   0x3 LB: > { %s2893_s22 = sadd.s32 4294967295, %s2836_s21   ;;  %s2075_s23 = sadd.s32 4294967294, %s2836_s21   ;;  %s2836_s21 = sphi %s2878_s21, %s3951_s21   ;;  %s2832_s20 = sphi %s2876_s20, %s3950_s20   ;;  %s2828_s19 = sphi %s2874_s19, %s3949_s19   ;;  %s2824_s18 = sphi %s2872_s18, %s3948_s18  }
   0x4   : > { %s2897_s24 = sadd.s32 1, %s2836_s21   ;;  %s115_s25 = sadd.s32 1, %s2832_s20 }
   0x5   : > { %s112_s26 = ssub.s32 %s2836_s21, %s2897_s24  ;;  %p125_p0 = scmp.ne.s32.totalorder %s2832_s20, %s2828_s19 }
   0x6   : > { %p113_p1 = scmp.eq.s32.totalorder %s112_s26, 0  ;;  %p126_p2 = scmp.eq.s32.totalorder %s2893_s22, 1 }
   0x7   : > { %p131_p3 = scmp.ne.s32.totalorder %s2828_s19, %s2824_s18  ;;  %p132_p4 = scmp.eq.s32.totalorder %s2075_s23, 1 }
   0x8   : > { %s2908_s27 = scalar_select %p113_p1, %s2832_s20, %s115_s25  }
   0x9   : > { %p2910_p5 = por %p126_p2, %p125_p0  ;;  %p2914_p6 = por %p132_p4, %p131_p3 }
   0xa   : > { %p2078_p7 = scmp.ge.s32.totalorder %s2836_s21, 1  ;;  %p194_p8 = scmp.lt.s32.totalorder %s2836_s21, 3 }
   0xc   : > { %p195_p9 = pnand %p2078_p7, %p194_p8 }
   0xd   : > { %s2080_s7 = sshll.u32 (!%p195_p9), %s2893_s22, 5  ;;  %s2160_s26 = sshll.u32 (!%p195_p9), %s2893_s22, 12 }
   0xe   : > { %198 = sbr.rel (%p195_p9) target bundleno = 824 (0x338), region = 36  ;;  %p229_p10 = scmp.lt.s32.totalorder (!%p195_p9), %s2080_s7, 63 }
   0xf   : > { %s3889_s10 = scalar_lea.hbm (!%p195_p9), %s3944_s4, %s2160_s26 }
  0x13   : > { %v274_v0 = vld [vmem:[%s3941_s1] sm:$0xff]  ;;  %s3953_s7 = smov (!%p229_p10, %s2080_s7), 63  ;;  %vm340_vm0 = vcmask 64512   ;;  %v283_v33 = vld [vmem:[%s3942_s2 + $0x38] sm:$0xff]  ;;  %v282_v34 = vld [vmem:[%s3942_s2 + $0x30] sm:$0xff]  ;;  %vm858_vm1 = vcmask 523264  }
  0x14   : > { %2282 = vmatprep.subr.mxu0 %v274_v0  ;;  %2476 = vmatprep.subr.mxu1 %v274_v0  ;;  %s2081_s8 = sshll.u32 %s3953_s7, 3  ;;  %v281_v35 = vld [vmem:[%s3942_s2 + $0x28] sm:$0xff]  ;;  %v280_v36 = vld [vmem:[%s3942_s2 + $0x20] sm:$0xff]  ;;  %v279_v37 = vld [vmem:[%s3942_s2 + $0x18] sm:$0xff]  ;;  %s2159_s12 = sshll.u32 %s3953_s7, 4  ;;  %vm1899_vm2 = vcmask 261120  }
  0x15   : > { %2283 = vmatpush3.msra.mxu0 %v274_v0  ;;  %2477 = vmatpush3.msra.mxu1 %v274_v0  ;;  %s2930_s11 = scalar_lea.vmem %s3940_s0, %s2081_s8  ;;  %v278_v38 = vld [vmem:[%s3942_s2 + $0x10] sm:$0xff]  ;;  %v277_v39 = vld [vmem:[%s3942_s2 + $0x8] sm:$0xff]  ;;  %v276_v40 = vld [vmem:[%s3942_s2] sm:$0xff]  ;;  %s217_s8 = sand.u32 1, %s2828_s19  }
  0x16   : > { %v242_v1 = vld [vmem:[%s2930_s11] sm:$0xff]  ;;  %v243_v2 = vld [vmem:[%s2930_s11 + $0x8] sm:$0xff]  ;;  %v244_v3 = vld [vmem:[%s2930_s11 + $0x10] sm:$0xff]  ;;  %2332 = vmatprep.subr.mxu1 %v283_v33  ;;  %s2079_s9 = sshll.u32 %s217_s8, 8  ;;  %s3662_s25 = scalar_lea.vmem %s3945_s5, %s2159_s12 }
  0x17   : > { %2284 = vmatprep.mubr.msk.f32.mxu0 %vm340_vm0, %v242_v1  ;;  %v245_v4 = vld [vmem:[%s2930_s11 + $0x18] sm:$0xff]  ;;  %v246_v5 = vld [vmem:[%s2930_s11 + $0x20] sm:$0xff]  ;;  %v259_v7 = vld [vmem:[%s2930_s11 + $0x88] sm:$0xff]  ;;  %s3665_s7 = scalar_lea.vmem [#allocation2], %s2079_s9  ;;  %s3899_s22 = scalar_lea.sflag [#allocation3], %s217_s8 }
  0x18   : > { %2285 = vmatmul.mubr.msk.f32.vlgmr.msra.gmra.mxu0 %vm340_vm0, %v243_v2  ;;  %v258_v6 = vld [vmem:[%s2930_s11 + $0x80] sm:$0xff]  ;;  %v260_v8 = vld [vmem:[%s2930_s11 + $0x90] sm:$0xff]  ;;  %v247_v9 = vld [vmem:[%s2930_s11 + $0x28] sm:$0xff]  ;;  %s1983_s30 = sshll.u32 %s3665_s7, 4  ;;  %s2839_s12 = smov [#allocation2]   ;;  %s3891_s30 = int_to_ptr.vmem [resolvable:$true] %s1983_s30 }
  0x19   : > { %2287 = vmatprep.mubr.msk.f32.mxu0 %vm340_vm0, %v244_v3  ;;  %2308 = vmatprep.mubr.msk.f32.mxu1 %vm340_vm0, %v258_v6  ;;  %v248_v10 = vld [vmem:[%s2930_s11 + $0x30] sm:$0xff]  ;;  %v261_v11 = vld [vmem:[%s2930_s11 + $0x98] sm:$0xff]  ;;  %v262_v12 = vld [vmem:[%s2930_s11 + $0xa0] sm:$0xff]  ;;  %s2780_s13 = sshll.u32 %s2839_s12, 4  ;;  %s2781_s13 = int_to_ptr.vmem [resolvable:$false] %s2780_s13 }
  0x1a   : > { %2309 = vmatmul.mubr.msk.f32.vlgmr.msra.gmra.mxu1 %vm340_vm0, %v259_v7  ;;  %v249_v13 = vld [vmem:[%s2930_s11 + $0x38] sm:$0xff]  ;;  %v250_v14 = vld [vmem:[%s2930_s11 + $0x40] sm:$0xff]  ;;  %v263_v15 = vld [vmem:[%s2930_s11 + $0xa8] sm:$0xff]  ;;  %s2782_s14 = scalar_lea.vmem %s2781_s13, 8192  ;;  %p2783_p0 = scmp.lt.s32.totalorder %s3891_s30, %s2781_s13 }
  0x1b   : > { %2311 = vmatprep.mubr.msk.f32.mxu1 %vm340_vm0, %v260_v8  ;;  %v264_v16 = vld [vmem:[%s2930_s11 + $0xb0] sm:$0xff]  ;;  %v251_v17 = vld [vmem:[%s2930_s11 + $0x48] sm:$0xff]  ;;  %v265_v19 = vld [vmem:[%s2930_s11 + $0xb8] sm:$0xff]  ;;  %2333 = vmatpush3.msra.mxu1 %v283_v33 }
  0x1c   : > { %2288 = vmatmul.mubr.msk.f32.gmra.mxu0 %vm340_vm0, %v245_v4  ;;  %v252_v18 = vld [vmem:[%s2930_s11 + $0x50] sm:$0xff]  ;;  %v266_v20 = vld [vmem:[%s2930_s11 + $0xc0] sm:$0xff]  ;;  %v253_v21 = vld [vmem:[%s2930_s11 + $0x58] sm:$0xff]  ;;  %2334 = vmatprep.subr.mxu1 %v282_v34 }
  0x1d   : > { %2290 = vmatprep.mubr.msk.f32.mxu0 %vm340_vm0, %v246_v5  ;;  %v254_v22 = vld [vmem:[%s2930_s11 + $0x60] sm:$0xff]  ;;  %v267_v23 = vld [vmem:[%s2930_s11 + $0xc8] sm:$0xff]  ;;  %v268_v24 = vld [vmem:[%s2930_s11 + $0xd0] sm:$0xff]  ;;  %2335 = vmatpush3.msra.mxu1 %v282_v34 }
  0x1e   : > { %2312 = vmatmul.mubr.msk.f32.gmra.mxu1 %vm340_vm0, %v261_v11  ;;  %v255_v25 = vld [vmem:[%s2930_s11 + $0x68] sm:$0xff]  ;;  %v256_v26 = vld [vmem:[%s2930_s11 + $0x70] sm:$0xff]  ;;  %v269_v27 = vld [vmem:[%s2930_s11 + $0xd8] sm:$0xff]  ;;  %2336 = vmatprep.subr.mxu1 %v281_v35 }
  0x1f   : > { %2314 = vmatprep.mubr.msk.f32.mxu1 %vm340_vm0, %v262_v12  ;;  %v270_v28 = vld [vmem:[%s2930_s11 + $0xe0] sm:$0xff]  ;;  %v257_v29 = vld [vmem:[%s2930_s11 + $0x78] sm:$0xff]  ;;  %v271_v30 = vld [vmem:[%s2930_s11 + $0xe8] sm:$0xff]  ;;  %2337 = vmatpush3.msra.mxu1 %v281_v35 }
  0x20   : > { %2291 = vmatmul.mubr.msk.f32.gmra.mxu0 %vm340_vm0, %v247_v9  ;;  %v272_v31 = vld [vmem:[%s2930_s11 + $0xf0] sm:$0xff]  ;;  %v273_v32 = vld [vmem:[%s2930_s11 + $0xf8] sm:$0xff]  ;;  %2338 = vmatprep.subr.mxu1 %v280_v36  ;;  %v3023_v41 = vld [vmem:[%s3941_s1 + $0x8] ss:$0 sm:$0xff]  ;;  %s2776_s11 = scalar_lea.vmem %s3891_s30, 4096 }
  0x21   : > { %2293 = vmatprep.mubr.msk.f32.mxu0 %vm340_vm0, %v248_v10  ;;  %2339 = vmatpush3.msra.mxu1 %v280_v36  ;;  %p2777_p11 = scmp.ne.s32.totalorder %s3891_s30, %s2776_s11  ;;  %p2784_p1 = scmp.lt.s32.totalorder %s2782_s14, %s2776_s11 }
  0x22   : > { %2315 = vmatmul.mubr.msk.f32.gmra.mxu1 %vm340_vm0, %v263_v15  ;;  %2340 = vmatprep.subr.mxu1 %v279_v37 }
  0x23   : > { %2317 = vmatprep.mubr.msk.f32.mxu1 %vm340_vm0, %v264_v16  ;;  %2341 = vmatpush3.msra.mxu1 %v279_v37  ;;  %p2778_p12 = pnand %p2777_p11, %p2910_p5  ;;  %p2785_p2 = por %p2784_p1, %p2783_p0 }
  0x24   : > { %2294 = vmatmul.mubr.msk.f32.gmra.mxu0 %vm340_vm0, %v249_v13  ;;  %2342 = vmatprep.subr.mxu1 %v278_v38 }
  0x25   : > { %2296 = vmatprep.mubr.msk.f32.mxu0 %vm340_vm0, %v250_v14  ;;  %2343 = vmatpush3.msra.mxu1 %v278_v38  ;;  %p2779_p13 = pneg %p2778_p12 }
  0x26   : > { %2318 = vmatmul.mubr.msk.f32.gmra.mxu1 %vm340_vm0, %v265_v19  ;;  %2344 = vmatprep.subr.mxu1 %v277_v39 }
  0x27   : > { %2320 = vmatprep.mubr.msk.f32.mxu1 %vm340_vm0, %v266_v20  ;;  %2345 = vmatpush3.msra.mxu1 %v277_v39  ;;  %p2786_p3 = pnand %p2785_p2, %p2779_p13 }
  0x28   : > { %2297 = vmatmul.mubr.msk.f32.gmra.mxu0 %vm340_vm0, %v251_v17  ;;  %2346 = vmatprep.subr.mxu1 %v276_v40 }
  0x29   : > { %2299 = vmatprep.mubr.msk.f32.mxu0 %vm340_vm0, %v252_v18  ;;  %2347 = vmatpush3.msra.mxu1 %v276_v40 }
  0x2a   : > { %2321 = vmatmul.mubr.msk.f32.gmra.mxu1 %vm340_vm0, %v267_v23 }
  0x2b   : > { %2323 = vmatprep.mubr.msk.f32.mxu1 %vm340_vm0, %v268_v24 }
  0x2c   : > { %2300 = vmatmul.mubr.msk.f32.gmra.mxu0 %vm340_vm0, %v253_v21 }
  0x2d   : > { %2302 = vmatprep.mubr.msk.f32.mxu0 %vm340_vm0, %v254_v22 }
  0x2e   : > { %2324 = vmatmul.mubr.msk.f32.gmra.mxu1 %vm340_vm0, %v269_v27 }
  0x2f   : > { %2326 = vmatprep.mubr.msk.f32.mxu1 %vm340_vm0, %v270_v28 }
  0x30   : > { %2303 = vmatmul.mubr.msk.f32.gmra.mxu0 %vm340_vm0, %v255_v25 }
  0x31   : > { %2305 = vmatprep.mubr.msk.f32.mxu0 %vm340_vm0, %v256_v26 }
  0x32   : > { %2327 = vmatmul.mubr.msk.f32.gmra.mxu1 %vm340_vm0, %v271_v30 }
  0x33   : > { %2329 = vmatprep.mubr.msk.f32.mxu1 %vm340_vm0, %v272_v31 }
  0x34   : > { %2306 = vmatmul.mubr.msk.f32.gmra.mxu0 %vm340_vm0, %v257_v29 }
  0x36   : > { %2330 = vmatmul.mubr.msk.f32.gmra.mxu1 %vm340_vm0, %v273_v32 }
  0xd8   : > { %v2286_v42 = vpop.f32.mrf.mxu0 }
  0xd9   : > { %v3026_v43 = vadd.f32 %v2286_v42, %v3023_v41 }
  0xda   : > { %v503_v44 = vpop.f32.mrf.mxu0  ;;  %v2310_v51 = vpop.f32.mrf.mxu1 }
  0xdb   : > { %v663_v45 = vsub.f32 0.0, %v3026_v43  ;;  %v3030_v46 = vadd.f32 %v3023_v41, %v503_v44  ;;  %v3037_v53 = vadd.f32 %v2310_v51, %v3023_v41 }
  0xdc   : > { %v2289_v47 = vpop.f32.mrf.mxu0  ;;  %v583_v57 = vpop.f32.mrf.mxu1 }
  0xdd   : > { %v696_v48 = vmul.f32 1.442695, %v663_v45  ;;  %v662_v49 = vsub.f32 0.0, %v3030_v46  ;;  %v3034_v50 = vadd.f32 %v2289_v47, %v3023_v41  ;;  %v679_v59 = vsub.f32 0.0, %v3037_v53 }
  0xde   : > { %v513_v52 = vpop.f32.mrf.mxu0  ;;  %v3045_v60 = vadd.f32 %v3023_v41, %v583_v57  ;;  %v2313_v0 = vpop.f32.mrf.mxu1 }
  0xdf   : > { %2520 = vpow2.f32 %v696_v48  ;;  %v694_v54 = vmul.f32 1.442695, %v662_v49  ;;  %v665_v55 = vsub.f32 0.0, %v3034_v50  ;;  %v3041_v56 = vadd.f32 %v3023_v41, %v513_v52 }
  0xe0   : > { %v2292_v58 = vpop.f32.mrf.mxu0  ;;  %v678_v2 = vsub.f32 0.0, %v3045_v60  ;;  %v3053_v3 = vadd.f32 %v2313_v0, %v3023_v41  ;;  %v593_v7 = vpop.f32.mrf.mxu1  ;;  %v728_v9 = vmul.f32 1.442695, %v679_v59 }
  0xe1   : > { %2522 = vpow2.f32 %v694_v54  ;;  %v700_v61 = vmul.f32 1.442695, %v665_v55  ;;  %v664_v62 = vsub.f32 0.0, %v3041_v56  ;;  %v3049_v63 = vadd.f32 %v2292_v58, %v3023_v41 }
  0xe2   : > { %v523_v1 = vpop.f32.mrf.mxu0  ;;  %v681_v10 = vsub.f32 0.0, %v3053_v3  ;;  %v3061_v11 = vadd.f32 %v3023_v41, %v593_v7  ;;  %v2316_v15 = vpop.f32.mrf.mxu1  ;;  %v726_v17 = vmul.f32 1.442695, %v678_v2 }
  0xe3   : > { %2524 = vpow2.f32 %v700_v61  ;;  %v698_v4 = vmul.f32 1.442695, %v664_v62  ;;  %v667_v5 = vsub.f32 0.0, %v3049_v63  ;;  %v3057_v6 = vadd.f32 %v3023_v41, %v523_v1 }
  0xe4   : > { %v2295_v8 = vpop.f32.mrf.mxu0  ;;  %v680_v18 = vsub.f32 0.0, %v3061_v11  ;;  %v603_v22 = vpop.f32.mrf.mxu1  ;;  %v732_v24 = vmul.f32 1.442695, %v681_v10  ;;  %v3101_v1 = vadd.f32 %v2316_v15, %v3023_v41 }
  0xe5   : > { %2526 = vpow2.f32 %v698_v4  ;;  %v704_v12 = vmul.f32 1.442695, %v667_v5  ;;  %v666_v13 = vsub.f32 0.0, %v3057_v6  ;;  %v3065_v14 = vadd.f32 %v2295_v8, %v3023_v41 }
  0xe6   : > { %v533_v16 = vpop.f32.mrf.mxu0  ;;  %v3076_v28 = vpop.f32.mrf.mxu1  ;;  %v730_v30 = vmul.f32 1.442695, %v680_v18 }
  0xe7   : > { %2528 = vpow2.f32 %v704_v12  ;;  %v702_v19 = vmul.f32 1.442695, %v666_v13  ;;  %v669_v20 = vsub.f32 0.0, %v3065_v14  ;;  %v3070_v21 = vadd.f32 %v3023_v41, %v533_v16 }
  0xe8   : > { %v2298_v23 = vpop.f32.mrf.mxu0  ;;  %2530 = vpow2.f32 %v728_v9  ;;  %v3082_v34 = vpop.f32.mrf.mxu1  ;;  %v3110_v12 = vadd.f32 %v3023_v41, %v603_v22 }
  0xe9   : > { %2532 = vpow2.f32 %v702_v19  ;;  %v708_v25 = vmul.f32 1.442695, %v669_v20  ;;  %v668_v26 = vsub.f32 0.0, %v3070_v21  ;;  %v3074_v27 = vadd.f32 %v2298_v23, %v3023_v41 }
  0xea   : > { %v543_v29 = vpop.f32.mrf.mxu0  ;;  %2534 = vpow2.f32 %v726_v17  ;;  %v3085_v40 = vpop.f32.mrf.mxu1  ;;  %v683_v23 = vsub.f32 0.0, %v3101_v1 }
  0xeb   : > { %2536 = vpow2.f32 %v708_v25  ;;  %v706_v31 = vmul.f32 1.442695, %v668_v26  ;;  %v671_v32 = vsub.f32 0.0, %v3074_v27  ;;  %v3080_v33 = vadd.f32 %v3023_v41, %v543_v29 }
  0xec   : > { %v2521_v35 = vpop.eup %2520  ;;  %v2301_v36 = vpop.f32.mrf.mxu0  ;;  %2538 = vpow2.f32 %v732_v24 }
  0xed   : > { %v759_v37 = vadd.f32 1.0, %v2521_v35  ;;  %2540 = vpow2.f32 %v706_v31  ;;  %v712_v38 = vmul.f32 1.442695, %v671_v32  ;;  %v670_v39 = vsub.f32 0.0, %v3080_v33  ;;  %v3093_v51 = vpop.f32.mrf.mxu1 }
  0xee   : > { %v2523_v42 = vpop.eup %2522  ;;  %v3088_v44 = vadd.f32 %v2301_v36, %v3023_v41  ;;  %v553_v45 = vpop.f32.mrf.mxu0  ;;  %2542 = vpow2.f32 %v730_v30  ;;  %v682_v32 = vsub.f32 0.0, %v3110_v12 }
  0xef   : > { %2544 = vrcp.f32 %v759_v37  ;;  %v758_v47 = vadd.f32 1.0, %v2523_v42  ;;  %v710_v48 = vmul.f32 1.442695, %v670_v39  ;;  %v3091_v49 = vadd.f32 %v3023_v41, %v553_v45  ;;  %v3104_v7 = vpop.f32.mrf.mxu1 }
  0xf0   : > { %v2525_v52 = vpop.eup %2524  ;;  %2546 = vpow2.f32 %v712_v38  ;;  %v673_v54 = vsub.f32 0.0, %v3088_v44  ;;  %v2304_v55 = vpop.f32.mrf.mxu0  ;;  %v736_v42 = vmul.f32 1.442695, %v683_v23 }
  0xf1   : > { %2548 = vrcp.f32 %v758_v47  ;;  %v761_v57 = vadd.f32 1.0, %v2525_v52  ;;  %v672_v58 = vsub.f32 0.0, %v3091_v49  ;;  %v3098_v59 = vadd.f32 %v2304_v55, %v3023_v41  ;;  %v3121_v29 = vpop.f32.mrf.mxu1 }
  0xf2   : > { %v2527_v61 = vpop.eup %2526  ;;  %2550 = vpow2.f32 %v710_v48  ;;  %v716_v62 = vmul.f32 1.442695, %v673_v54  ;;  %v563_v0 = vpop.f32.mrf.mxu0  ;;  %v734_v55 = vmul.f32 1.442695, %v682_v32 }
  0xf3   : > { %2552 = vrcp.f32 %v761_v57  ;;  %v760_v2 = vadd.f32 1.0, %v2527_v61  ;;  %v714_v4 = vmul.f32 1.442695, %v672_v58  ;;  %v675_v5 = vsub.f32 0.0, %v3098_v59  ;;  %v2328_v52 = vpop.f32.mrf.mxu1 }
  0xf4   : > { %v2529_v8 = vpop.eup %2528  ;;  %2554 = vpow2.f32 %v716_v62  ;;  %v3107_v9 = vadd.f32 %v3023_v41, %v563_v0  ;;  %v2307_v10 = vpop.f32.mrf.mxu0  ;;  %v3127_v62 = vadd.f32 %v3076_v28, %v3023_v41  ;;  %v3134_v28 = vadd.f32 %v3023_v41, %v3082_v34 }
  0xf5   : > { %v2531_v13 = vpop.eup %2530  ;;  %2556 = vrcp.f32 %v760_v2  ;;  %v763_v15 = vadd.f32 1.0, %v2529_v8  ;;  %v720_v16 = vmul.f32 1.442695, %v675_v5  ;;  %v3113_v17 = vadd.f32 %v2307_v10, %v3023_v41  ;;  %v643_v5 = vpop.f32.mrf.mxu1 }
  0xf6   : > { %v2533_v18 = vpop.eup %2532  ;;  %2558 = vpow2.f32 %v714_v4  ;;  %v674_v19 = vsub.f32 0.0, %v3107_v9  ;;  %v573_v20 = vpop.f32.mrf.mxu0  ;;  %v775_v4 = vadd.f32 1.0, %v2531_v13  ;;  %v3145_v34 = vadd.f32 %v3023_v41, %v3093_v51 }
  0xf7   : > { %v2535_v24 = vpop.eup %2534  ;;  %2560 = vrcp.f32 %v763_v15  ;;  %v762_v25 = vadd.f32 1.0, %v2533_v18  ;;  %v677_v22 = vsub.f32 0.0, %v3113_v17  ;;  %v3119_v26 = vadd.f32 %v3023_v41, %v573_v20 }
  0xf8   : > { %v2537_v30 = vpop.eup %2536  ;;  %2562 = vpow2.f32 %v720_v16  ;;  %v718_v31 = vmul.f32 1.442695, %v674_v19  ;;  %v774_v16 = vadd.f32 1.0, %v2535_v24 }
  0xf9   : > { %v2539_v35 = vpop.eup %2538  ;;  %2564 = vrcp.f32 %v762_v25  ;;  %v765_v36 = vadd.f32 1.0, %v2537_v30  ;;  %v724_v37 = vmul.f32 1.442695, %v677_v22  ;;  %v676_v38 = vsub.f32 0.0, %v3119_v26  ;;  %v2331_v25 = vpop.f32.mrf.mxu1 }
  0xfa   : > { %v2541_v39 = vpop.eup %2540  ;;  %2566 = vpow2.f32 %v718_v31  ;;  %v777_v24 = vadd.f32 1.0, %v2539_v35  ;;  %v3153_v35 = vadd.f32 %v3104_v7, %v3023_v41 }
  0xfb   : > { %v2543_v45 = vpop.eup %2542  ;;  %2568 = vrcp.f32 %v765_v36  ;;  %v764_v47 = vadd.f32 1.0, %v2541_v39  ;;  %v722_v48 = vmul.f32 1.442695, %v676_v38  ;;  %v684_v36 = vsub.f32 0.0, %v3134_v28  ;;  %v653_v7 = vpop.f32.mrf.mxu1 }
  0xfc   : > { %v2545_v54 = vpop.eup %2544  ;;  %2570 = vpow2.f32 %v724_v37  ;;  %v776_v31 = vadd.f32 1.0, %v2543_v45  ;;  %v686_v45 = vsub.f32 0.0, %v3145_v34 }
  0xfd   : > { %v2547_v57 = vpop.eup %2546  ;;  %2572 = vrcp.f32 %v764_v47  ;;  %v823_v10 = vmul.f32 %v2545_v54, %v3026_v43  ;;  %v685_v43 = vsub.f32 0.0, %v3127_v62  ;;  %v3163_v47 = vadd.f32 %v2328_v52, %v3023_v41 }
  0xfe   : > { %v2549_v58 = vpop.eup %2548  ;;  %v767_v61 = vadd.f32 1.0, %v2547_v57  ;;  %2574 = vpow2.f32 %v736_v42  ;;  %v3167_v57 = vadd.f32 %v3023_v41, %v643_v5 }
  0xff   : > { %v2551_v0 = vpop.eup %2550  ;;  %v822_v2 = vmul.f32 %v2549_v58, %v3030_v46  ;;  %2576 = vpow2.f32 %v722_v48  ;;  %v3138_v46 = vadd.f32 %v3085_v40, %v3023_v41  ;;  %v740_v38 = vmul.f32 1.442695, %v685_v43 }
 0x100   : > { %v2553_v8 = vpop.eup %2552  ;;  %v766_v15 = vadd.f32 1.0, %v2551_v0  ;;  %2578 = vpow2.f32 %v734_v55  ;;  %v738_v58 = vmul.f32 1.442695, %v684_v36 }
 0x101   : > { %v2555_v18 = vpop.eup %2554  ;;  %2580 = vrcp.f32 %v767_v61  ;;  %2348 = vmatprep.mubr.msk.f32.mxu1 %vm858_vm1, %v822_v2  ;;  %v825_v40 = vmul.f32 %v2553_v8, %v3034_v50  ;;  %v3158_v50 = vadd.f32 %v3023_v41, %v3121_v29  ;;  %v3174_v2 = vadd.f32 %v3023_v41, %v653_v7 }
 0x102   : > { %v2557_v13 = vpop.eup %2556  ;;  %2582 = vrcp.f32 %v766_v15  ;;  %v769_v19 = vadd.f32 1.0, %v2555_v18  ;;  %2349 = vmatmul.mubr.msk.f32.vlgmr.msra.gmra.mxu1 %vm858_vm1, %v823_v10  ;;  %v742_v8 = vmul.f32 1.442695, %v686_v45  ;;  %v691_v10 = vsub.f32 0.0, %v3163_v47 }
 0x103   : > { %v2559_v20 = vpop.eup %2558  ;;  %v824_v23 = vmul.f32 %v2557_v13, %v3041_v56  ;;  %2584 = vrcp.f32 %v775_v4  ;;  %v687_v56 = vsub.f32 0.0, %v3138_v46  ;;  %v690_v18 = vsub.f32 0.0, %v3167_v57 }
 0x104   : > { %v2561_v22 = vpop.eup %2560  ;;  %v768_v30 = vadd.f32 1.0, %v2559_v20  ;;  %2586 = vrcp.f32 %v774_v16  ;;  %v3181_v13 = vadd.f32 %v2331_v25, %v3023_v41 }
 0x105   : > { %v2563_v32 = vpop.eup %2562  ;;  %2588 = vrcp.f32 %v769_v19  ;;  %2351 = vmatprep.mubr.msk.f32.mxu1 %vm858_vm1, %v824_v23  ;;  %v827_v54 = vmul.f32 %v2561_v22, %v3049_v63  ;;  %v744_v61 = vmul.f32 1.442695, %v687_v56  ;;  %v688_v63 = vsub.f32 0.0, %v3158_v50 }
 0x106   : > { %v2565_v51 = vpop.eup %2564  ;;  %2590 = vrcp.f32 %v768_v30  ;;  %v771_v37 = vadd.f32 1.0, %v2563_v32  ;;  %2352 = vmatmul.mubr.msk.f32.gmra.mxu1 %vm858_vm1, %v825_v40  ;;  %v752_v22 = vmul.f32 1.442695, %v691_v10  ;;  %v750_v25 = vmul.f32 1.442695, %v690_v18 }
 0x107   : > { %v2567_v39 = vpop.eup %2566  ;;  %v826_v42 = vmul.f32 %v2565_v51, %v3057_v6  ;;  %2592 = vrcp.f32 %v777_v24  ;;  %v689_v6 = vsub.f32 0.0, %v3153_v35  ;;  %v746_v23 = vmul.f32 1.442695, %v688_v63 }
 0x108   : > { %v2569_v48 = vpop.eup %2568  ;;  %v770_v55 = vadd.f32 1.0, %v2567_v39  ;;  %2594 = vrcp.f32 %v776_v31  ;;  %v692_v24 = vsub.f32 0.0, %v3174_v2  ;;  %v693_v30 = vsub.f32 0.0, %v3181_v13 }
 0x109   : > { %v2571_v29 = vpop.eup %2570  ;;  %2596 = vrcp.f32 %v771_v37  ;;  %2354 = vmatprep.mubr.msk.f32.mxu1 %vm858_vm1, %v826_v42  ;;  %v829_v16 = vmul.f32 %v2569_v48, %v3065_v14  ;;  %v748_v20 = vmul.f32 1.442695, %v689_v6 }
 0x10a   : > { %v2573_v0 = vpop.eup %2572  ;;  %2598 = vrcp.f32 %v770_v55  ;;  %v773_v52 = vadd.f32 1.0, %v2571_v29  ;;  %2355 = vmatmul.mubr.msk.f32.gmra.mxu1 %vm858_vm1, %v827_v54  ;;  %v754_v51 = vmul.f32 1.442695, %v692_v24  ;;  %v756_v42 = vmul.f32 1.442695, %v693_v30 }
 0x10b   : > { %v2575_v4 = vpop.eup %2574  ;;  %v828_v5 = vmul.f32 %v2573_v0, %v3070_v21  ;;  %2600 = vpow2.f32 %v740_v38 }
 0x10c   : > { %v2577_v15 = vpop.eup %2576  ;;  %2602 = vrcp.f32 %v773_v52  ;;  %v779_v38 = vadd.f32 1.0, %v2575_v4 }
 0x10d   : > { %v2579_v19 = vpop.eup %2578  ;;  %v772_v43 = vadd.f32 1.0, %v2577_v15  ;;  %2604 = vpow2.f32 %v738_v58  ;;  %2357 = vmatprep.mubr.msk.f32.mxu1 %vm858_vm1, %v828_v5 }
 0x10e   : > { %v2581_v21 = vpop.eup %2580  ;;  %2606 = vpow2.f32 %v744_v61  ;;  %2358 = vmatmul.mubr.msk.f32.gmra.mxu1 %vm858_vm1, %v829_v16  ;;  %v778_v36 = vadd.f32 1.0, %v2579_v19 }
 0x10f   : > { %v2583_v14 = vpop.eup %2582  ;;  %2608 = vrcp.f32 %v772_v43  ;;  %v831_v32 = vmul.f32 %v2581_v21, %v3074_v27 }
 0x110   : > { %v3186_v40 = vpop.eup %2584  ;;  %v830_v41 = vmul.f32 %v2583_v14, %v3080_v33  ;;  %2610 = vpow2.f32 %v742_v8 }
 0x111   : > { %v2587_v31 = vpop.eup %2586  ;;  %2612 = vpow2.f32 %v748_v20 }
 0x112   : > { %v2589_v56 = vpop.eup %2588  ;;  %2614 = vpow2.f32 %v746_v23  ;;  %2360 = vmatprep.mubr.msk.f32.mxu1 %vm858_vm1, %v830_v41  ;;  %v838_v10 = vmul.f32 %v2587_v31, %v3045_v60 }
 0x113   : > { %v2591_v37 = vpop.eup %2590  ;;  %2616 = vpow2.f32 %v752_v22  ;;  %2361 = vmatmul.mubr.msk.f32.gmra.mxu1 %vm858_vm1, %v831_v32  ;;  %v833_v27 = vmul.f32 %v2589_v56, %v3088_v44 }
 0x114   : > { %v2593_v33 = vpop.eup %2592  ;;  %v832_v39 = vmul.f32 %v2591_v37, %v3091_v49  ;;  %2618 = vpow2.f32 %v750_v25 }
 0x115   : > { %v2595_v45 = vpop.eup %2594  ;;  %2620 = vrcp.f32 %v778_v36  ;;  %v841_v23 = vmul.f32 %v2593_v33, %v3053_v3 }
 0x116   : > { %v2597_v7 = vpop.eup %2596  ;;  %2363 = vmatprep.mubr.msk.f32.mxu1 %vm858_vm1, %v832_v39  ;;  %2622 = vpow2.f32 %v754_v51 }
 0x117   : > { %v2599_v48 = vpop.eup %2598  ;;  %2624 = vrcp.f32 %v779_v38  ;;  %2364 = vmatmul.mubr.msk.f32.gmra.mxu1 %vm858_vm1, %v833_v27  ;;  %v835_v49 = vmul.f32 %v2597_v7, %v3098_v59  ;;  %v324_v27 = vld [vmem:[%s3943_s3 + $0x138] sm:$0xff]  ;;  %v326_v7 = vld [vmem:[%s3943_s3 + $0x148] sm:$0xff] }
 0x118   : > { %v2601_v54 = vpop.eup %2600  ;;  %v834_v55 = vmul.f32 %v2599_v48, %v3107_v9  ;;  %2626 = vpow2.f32 %v756_v42  ;;  %v329_v42 = vld [vmem:[%s3943_s3 + $0x160] sm:$0xff]  ;;  %v322_v48 = vld [vmem:[%s3943_s3 + $0x128] sm:$0xff] }
 0x119   : > { %v2603_v29 = vpop.eup %2602  ;;  %v781_v58 = vadd.f32 1.0, %v2601_v54  ;;  %v321_v54 = vld [vmem:[%s3943_s3 + $0x120] sm:$0xff] }
 0x11a   : > { %v2605_v61 = vpop.eup %2604  ;;  %2366 = vmatprep.mubr.msk.f32.mxu1 %vm858_vm1, %v834_v55  ;;  %v837_v5 = vmul.f32 %v2603_v29, %v3113_v17  ;;  %v839_v17 = vmul.f32 %v3186_v40, %v3037_v53  ;;  %v323_v55 = vld [vmem:[%s3943_s3 + $0x130] sm:$0xff] }
 0x11b   : > { %v2607_v44 = vpop.eup %2606  ;;  %v780_v6 = vadd.f32 1.0, %v2605_v61  ;;  %2367 = vmatmul.mubr.msk.f32.gmra.mxu1 %vm858_vm1, %v835_v49  ;;  %2628 = vrcp.f32 %v781_v58  ;;  %v319_v29 = vld [vmem:[%s3943_s3 + $0x110] sm:$0xff]  ;;  %v318_v49 = vld [vmem:[%s3943_s3 + $0x108] sm:$0xff]  ;;  %v320_v58 = vld [vmem:[%s3943_s3 + $0x118] sm:$0xff] }
 0x11c   : > { %v2609_v0 = vpop.eup %2608  ;;  %v783_v52 = vadd.f32 1.0, %v2607_v44  ;;  %v316_v61 = vld [vmem:[%s3943_s3 + $0xf8] sm:$0xff]  ;;  %v315_v44 = vld [vmem:[%s3943_s3 + $0xf0] sm:$0xff] }
 0x11d   : > { %v2611_v63 = vpop.eup %2610  ;;  %v836_v4 = vmul.f32 %v2609_v0, %v3119_v26  ;;  %2630 = vrcp.f32 %v780_v6  ;;  %v840_v26 = vmul.f32 %v2595_v45, %v3061_v11  ;;  %v325_v45 = vld [vmem:[%s3943_s3 + $0x140] sm:$0xff] }
 0x11e   : > { %v2613_v9 = vpop.eup %2612  ;;  %v782_v8 = vadd.f32 1.0, %v2611_v63  ;;  %2632 = vrcp.f32 %v783_v52  ;;  %v317_v6 = vld [vmem:[%s3943_s3 + $0x100] sm:$0xff]  ;;  %v312_v52 = vld [vmem:[%s3943_s3 + $0xd8] sm:$0xff]  ;;  %v314_v63 = vld [vmem:[%s3943_s3 + $0xe8] sm:$0xff] }
 0x11f   : > { %v2615_v59 = vpop.eup %2614  ;;  %2369 = vmatprep.mubr.msk.f32.mxu1 %vm858_vm1, %v836_v4  ;;  %v785_v16 = vadd.f32 1.0, %v2613_v9  ;;  %v313_v0 = vld [vmem:[%s3943_s3 + $0xe0] sm:$0xff]  ;;  %v310_v4 = vld [vmem:[%s3943_s3 + $0xc8] sm:$0xff] }
 0x120   : > { %v2617_v15 = vpop.eup %2616  ;;  %2634 = vrcp.f32 %v782_v8  ;;  %v784_v18 = vadd.f32 1.0, %v2615_v59  ;;  %2370 = vmatmul.mubr.msk.f32.gmra.mxu1 %vm858_vm1, %v837_v5  ;;  %v309_v9 = vld [vmem:[%s3943_s3 + $0xc0] sm:$0xff]  ;;  %v311_v5 = vld [vmem:[%s3943_s3 + $0xd0] sm:$0xff]  ;;  %v306_v59 = vld [vmem:[%s3943_s3 + $0xa8] sm:$0xff] }
 0x121   : > { %v2619_v19 = vpop.eup %2618  ;;  %2372 = vmatprep.mubr.msk.f32.mxu1 %vm858_vm1, %v838_v10  ;;  %v787_v24 = vadd.f32 1.0, %v2617_v15  ;;  %v307_v8 = vld [vmem:[%s3943_s3 + $0xb0] sm:$0xff]  ;;  %v308_v10 = vld [vmem:[%s3943_s3 + $0xb8] sm:$0xff] }
 0x122   : > { %v2621_v43 = vpop.eup %2620  ;;  %2636 = vrcp.f32 %v784_v18  ;;  %v786_v60 = vadd.f32 1.0, %v2619_v19  ;;  %v304_v15 = vld [vmem:[%s3943_s3 + $0x98] sm:$0xff]  ;;  %v305_v18 = vld [vmem:[%s3943_s3 + $0xa0] sm:$0xff] }
 0x123   : > { %v2623_v20 = vpop.eup %2622  ;;  %2638 = vrcp.f32 %v785_v16  ;;  %v842_v22 = vmul.f32 %v2621_v43, %v3110_v12  ;;  %v303_v16 = vld [vmem:[%s3943_s3 + $0x90] sm:$0xff]  ;;  %v301_v19 = vld [vmem:[%s3943_s3 + $0x80] sm:$0xff]  ;;  %v302_v43 = vld [vmem:[%s3943_s3 + $0x88] sm:$0xff] }
 0x124   : > { %v2625_v21 = vpop.eup %2624  ;;  %2373 = vmatmul.mubr.msk.f32.gmra.mxu1 %vm858_vm1, %v839_v17  ;;  %2640 = vrcp.f32 %v786_v60  ;;  %v788_v11 = vadd.f32 1.0, %v2623_v20  ;;  %v298_v17 = vld [vmem:[%s3943_s3 + $0x68] sm:$0xff]  ;;  %v297_v60 = vld [vmem:[%s3943_s3 + $0x60] sm:$0xff]  ;;  %v299_v20 = vld [vmem:[%s3943_s3 + $0x70] sm:$0xff] }
 0x125   : > { %v2627_v14 = vpop.eup %2626  ;;  %2375 = vmatprep.mubr.msk.f32.mxu1 %vm858_vm1, %v840_v26  ;;  %v843_v41 = vmul.f32 %v2625_v21, %v3101_v1  ;;  %2642 = vrcp.f32 %v787_v24  ;;  %v300_v26 = vld [vmem:[%s3943_s3 + $0x78] sm:$0xff]  ;;  %v295_v21 = vld [vmem:[%s3943_s3 + $0x50] sm:$0xff] }
 0x126   : > { %v789_v53 = vadd.f32 1.0, %v2627_v14  ;;  %2644 = vrcp.f32 %v788_v11  ;;  %v296_v24 = vld [vmem:[%s3943_s3 + $0x58] sm:$0xff]  ;;  %v293_v11 = vld [vmem:[%s3943_s3 + $0x40] sm:$0xff] }
 0x127   : > { %v292_v14 = vld [vmem:[%s3943_s3 + $0x38] sm:$0xff] }
 0x128   : > { %2376 = vmatmul.mubr.msk.f32.gmra.mxu1 %vm858_vm1, %v841_v23  ;;  %v2629_v40 = vpop.eup %2628  ;;  %2646 = vrcp.f32 %v789_v53  ;;  %v294_v23 = vld [vmem:[%s3943_s3 + $0x48] sm:$0xff]  ;;  %v288_v53 = vld [vmem:[%s3943_s3 + $0x18] sm:$0xff] }
 0x129   : > { %2378 = vmatprep.mubr.msk.f32.mxu1 %vm858_vm1, %v842_v22  ;;  %v845_v12 = vmul.f32 %v2629_v40, %v3127_v62  ;;  %v291_v22 = vld [vmem:[%s3943_s3 + $0x30] sm:$0xff]  ;;  %v290_v40 = vld [vmem:[%s3943_s3 + $0x28] sm:$0xff] }
 0x12a   : > { %v2631_v3 = vpop.eup %2630 }
 0x12b   : > { %v844_v25 = vmul.f32 %v2631_v3, %v3134_v28  ;;  %v2633_v30 = vpop.eup %2632  ;;  %v286_v3 = vld [vmem:[%s3943_s3 + $0x8] sm:$0xff] }
 0x12c   : > { %2379 = vmatmul.mubr.msk.f32.gmra.mxu1 %vm858_vm1, %v843_v41  ;;  %v847_v36 = vmul.f32 %v2633_v30, %v3138_v46  ;;  %v289_v41 = vld [vmem:[%s3943_s3 + $0x20] sm:$0xff]  ;;  %v287_v30 = vld [vmem:[%s3943_s3 + $0x10] sm:$0xff] }
 0x12d   : > { %v2635_v31 = vpop.eup %2634  ;;  %2381 = vmatprep.mubr.msk.f32.mxu1 %vm858_vm1, %v844_v25  ;;  %v285_v25 = vld [vmem:[%s3943_s3] sm:$0xff] }
 0x12e   : > { %v846_v1 = vmul.f32 %v2635_v31, %v3145_v34  ;;  %v3386_v31 = vld [vmem:[%s3942_s2 + $0x40] ss:$0 sm:$0xff] }
 0x12f   : > { %v2637_v32 = vpop.eup %2636 }
 0x130   : > { %2382 = vmatmul.mubr.msk.f32.gmra.mxu1 %vm858_vm1, %v845_v12  ;;  %v2639_v56 = vpop.eup %2638  ;;  %v848_v51 = vmul.f32 %v2637_v32, %v3158_v50  ;;  %v2838_v12 = vmov 0.0  }
 0x131   : > { %2384 = vmatprep.mubr.msk.f32.mxu1 %vm858_vm1, %v846_v1  ;;  %v2641_v28 = vpop.eup %2640  ;;  %v849_v62 = vmul.f32 %v2639_v56, %v3153_v35  ;;  %v331_v35 = vld [vmem:[%s3943_s3 + $0x170] sm:$0xff]  ;;  %1448 = vmatprep.mubr.f32.mxu0 %v2838_v12 }
 0x132   : > { %v2643_v37 = vpop.eup %2642  ;;  %v850_v38 = vmul.f32 %v2641_v28, %v3167_v57  ;;  %1384 = vmatprep.subr.mxu0 %v331_v35  ;;  %v332_v57 = vld [vmem:[%s3943_s3 + $0x178] sm:$0xff] }
 0x133   : > { %v2645_v34 = vpop.eup %2644  ;;  %v851_v46 = vmul.f32 %v2643_v37, %v3163_v47  ;;  %v330_v47 = vld [vmem:[%s3943_s3 + $0x168] sm:$0xff]  ;;  %2396 = vmatprep.subr.mxu1 %v332_v57 }
 0x134   : > { %2385 = vmatmul.mubr.msk.f32.gmra.mxu1 %vm858_vm1, %v847_v36  ;;  %v852_v50 = vmul.f32 %v2645_v34, %v3174_v2  ;;  %1385 = vmatpush1.msra.mxu0 %v330_v47  ;;  %v328_v2 = vld [vmem:[%s3943_s3 + $0x158] sm:$0xff] }
 0x135   : > { %2387 = vmatprep.mubr.msk.f32.mxu1 %vm858_vm1, %v848_v51  ;;  %v2647_v33 = vpop.eup %2646  ;;  %1386 = vmatprep.subr.mxu0 %v328_v2 }
 0x136   : > { %v853_v39 = vmul.f32 %v2647_v33, %v3181_v13  ;;  %v327_v13 = vld [vmem:[%s3943_s3 + $0x150] sm:$0xff]  ;;  %2397 = vmatpush3.msra.mxu1 %v332_v57 }
 0x137   : > { %1387 = vmatpush1.msra.mxu0 %v327_v13  ;;  %2398 = vmatprep.subr.mxu1 %v329_v42 }
 0x138   : > { %2388 = vmatmul.mubr.msk.f32.gmra.mxu1 %vm858_vm1, %v849_v62  ;;  %1388 = vmatprep.subr.mxu0 %v325_v45 }
 0x139   : > { %2390 = vmatprep.mubr.msk.f32.mxu1 %vm858_vm1, %v850_v38  ;;  %2399 = vmatpush3.msra.mxu1 %v329_v42 }
 0x13a   : > { %1389 = vmatpush1.msra.mxu0 %v324_v27  ;;  %2400 = vmatprep.subr.mxu1 %v326_v7 }
 0x13b   : > { %1390 = vmatprep.subr.mxu0 %v322_v48  ;;  %2401 = vmatpush3.msra.mxu1 %v326_v7 }
 0x13c   : > { %2391 = vmatmul.mubr.msk.f32.gmra.mxu1 %vm858_vm1, %v851_v46  ;;  %1391 = vmatpush1.msra.mxu0 %v321_v54 }
 0x13d   : > { %2393 = vmatprep.mubr.msk.f32.mxu1 %vm858_vm1, %v852_v50  ;;  %2402 = vmatprep.subr.mxu1 %v323_v55 }
 0x13e   : > { %1392 = vmatprep.subr.mxu0 %v319_v29  ;;  %2403 = vmatpush3.msra.mxu1 %v323_v55 }
 0x13f   : > { %1393 = vmatpush1.msra.mxu0 %v318_v49  ;;  %2404 = vmatprep.subr.mxu1 %v320_v58 }
 0x140   : > { %2394 = vmatmul.mubr.msk.f32.gmra.mxu1 %vm858_vm1, %v853_v39  ;;  %1394 = vmatprep.subr.mxu0 %v316_v61 }
 0x141   : > { %2405 = vmatpush3.msra.mxu1 %v320_v58  ;;  %1395 = vmatpush1.msra.mxu0 %v315_v44 }
 0x142   : > { %2406 = vmatprep.subr.mxu1 %v317_v6  ;;  %1396 = vmatprep.subr.mxu0 %v313_v0 }
 0x143   : > { %2407 = vmatpush3.msra.mxu1 %v317_v6  ;;  %1397 = vmatpush1.msra.mxu0 %v312_v52 }
 0x144   : > { %2408 = vmatprep.subr.mxu1 %v314_v63  ;;  %1398 = vmatprep.subr.mxu0 %v310_v4 }
 0x145   : > { %2409 = vmatpush3.msra.mxu1 %v314_v63  ;;  %1399 = vmatpush1.msra.mxu0 %v309_v9 }
 0x146   : > { %2410 = vmatprep.subr.mxu1 %v311_v5  ;;  %1400 = vmatprep.subr.mxu0 %v307_v8 }
 0x147   : > { %2411 = vmatpush3.msra.mxu1 %v311_v5  ;;  %1401 = vmatpush1.msra.mxu0 %v306_v59 }
 0x148   : > { %2412 = vmatprep.subr.mxu1 %v308_v10  ;;  %1402 = vmatprep.subr.mxu0 %v304_v15 }
 0x149   : > { %2413 = vmatpush3.msra.mxu1 %v308_v10  ;;  %1403 = vmatpush1.msra.mxu0 %v303_v16 }
 0x14a   : > { %2414 = vmatprep.subr.mxu1 %v305_v18  ;;  %1404 = vmatprep.subr.mxu0 %v301_v19 }
 0x14b   : > { %2415 = vmatpush3.msra.mxu1 %v305_v18  ;;  %1405 = vmatpush1.msra.mxu0 %v300_v26 }
 0x14c   : > { %2416 = vmatprep.subr.mxu1 %v302_v43  ;;  %1406 = vmatprep.subr.mxu0 %v298_v17 }
 0x14d   : > { %2417 = vmatpush3.msra.mxu1 %v302_v43  ;;  %1407 = vmatpush1.msra.mxu0 %v297_v60 }
 0x14e   : > { %2418 = vmatprep.subr.mxu1 %v299_v20  ;;  %1408 = vmatprep.subr.mxu0 %v295_v21 }
 0x14f   : > { %2419 = vmatpush3.msra.mxu1 %v299_v20  ;;  %1409 = vmatpush1.msra.mxu0 %v294_v23 }
 0x150   : > { %2420 = vmatprep.subr.mxu1 %v296_v24  ;;  %1410 = vmatprep.subr.mxu0 %v292_v14 }
 0x151   : > { %2421 = vmatpush3.msra.mxu1 %v296_v24  ;;  %1411 = vmatpush1.msra.mxu0 %v291_v22 }
 0x152   : > { %2422 = vmatprep.subr.mxu1 %v293_v11  ;;  %1412 = vmatprep.subr.mxu0 %v289_v41 }
 0x153   : > { %2423 = vmatpush3.msra.mxu1 %v293_v11  ;;  %1413 = vmatpush1.msra.mxu0 %v288_v53 }
 0x154   : > { %2424 = vmatprep.subr.mxu1 %v290_v40  ;;  %1414 = vmatprep.subr.mxu0 %v286_v3 }
 0x155   : > { %2425 = vmatpush3.msra.mxu1 %v290_v40  ;;  %1415 = vmatpush1.msra.mxu0 %v285_v25 }
 0x156   : > { %2426 = vmatprep.subr.mxu1 %v287_v30 }
 0x157   : > { %2427 = vmatpush3.msra.mxu1 %v287_v30 }
 0x1c2   : > { %v2350_v1 = vpop.f32.mrf.mxu1 }
 0x1c3   : > { %v3389_v32 = vadd.f32 %v2350_v1, %v3386_v31 }
 0x1c4   : > { %v1021_v36 = vpop.f32.mrf.mxu1 }
 0x1c5   : > { %v1181_v56 = vsub.f32 0.0, %v3389_v32  ;;  %v3393_v51 = vadd.f32 %v3386_v31, %v1021_v36 }
 0x1c6   : > { %v2353_v28 = vpop.f32.mrf.mxu1 }
 0x1c7   : > { %v1214_v62 = vmul.f32 1.442695, %v1181_v56  ;;  %v1180_v37 = vsub.f32 0.0, %v3393_v51  ;;  %v3397_v38 = vadd.f32 %v2353_v28, %v3386_v31 }
 0x1c8   : > { %v1031_v34 = vpop.f32.mrf.mxu1 }
 0x1c9   : > { %2648 = vpow2.f32 %v1214_v62  ;;  %v1212_v46 = vmul.f32 1.442695, %v1180_v37  ;;  %v1183_v33 = vsub.f32 0.0, %v3397_v38  ;;  %v3401_v50 = vadd.f32 %v3386_v31, %v1031_v34 }
 0x1ca   : > { %v2356_v39 = vpop.f32.mrf.mxu1 }
 0x1cb   : > { %2650 = vpow2.f32 %v1212_v46  ;;  %v1218_v35 = vmul.f32 1.442695, %v1183_v33  ;;  %v1182_v47 = vsub.f32 0.0, %v3401_v50  ;;  %v3405_v57 = vadd.f32 %v2356_v39, %v3386_v31 }
 0x1cc   : > { %v1041_v2 = vpop.f32.mrf.mxu1 }
 0x1cd   : > { %2652 = vpow2.f32 %v1218_v35  ;;  %v1216_v13 = vmul.f32 1.442695, %v1182_v47  ;;  %v1185_v42 = vsub.f32 0.0, %v3405_v57  ;;  %v3409_v45 = vadd.f32 %v3386_v31, %v1041_v2 }
 0x1ce   : > { %v2359_v27 = vpop.f32.mrf.mxu1 }
 0x1cf   : > { %2654 = vpow2.f32 %v1216_v13  ;;  %v1222_v7 = vmul.f32 1.442695, %v1185_v42  ;;  %v1184_v48 = vsub.f32 0.0, %v3409_v45  ;;  %v3413_v54 = vadd.f32 %v2359_v27, %v3386_v31 }
 0x1d0   : > { %v1051_v55 = vpop.f32.mrf.mxu1 }
 0x1d1   : > { %2656 = vpow2.f32 %v1222_v7  ;;  %v1220_v29 = vmul.f32 1.442695, %v1184_v48  ;;  %v1187_v49 = vsub.f32 0.0, %v3413_v54  ;;  %v3417_v58 = vadd.f32 %v3386_v31, %v1051_v55 }
 0x1d3   : > { %2658 = vpow2.f32 %v1220_v29  ;;  %v1226_v61 = vmul.f32 1.442695, %v1187_v49  ;;  %v1186_v44 = vsub.f32 0.0, %v3417_v58  ;;  %v2362_v6 = vpop.f32.mrf.mxu1 }
 0x1d4   : > { %v3421_v0 = vadd.f32 %v2362_v6, %v3386_v31 }
 0x1d5   : > { %2660 = vpow2.f32 %v1226_v61  ;;  %v1224_v52 = vmul.f32 1.442695, %v1186_v44  ;;  %v1061_v63 = vpop.f32.mrf.mxu1 }
 0x1d6   : > { %v2649_v4 = vpop.eup %2648  ;;  %v1189_v9 = vsub.f32 0.0, %v3421_v0  ;;  %v3425_v5 = vadd.f32 %v3386_v31, %v1061_v63 }
 0x1d7   : > { %v1277_v8 = vadd.f32 1.0, %v2649_v4  ;;  %2662 = vpow2.f32 %v1224_v52  ;;  %v2365_v59 = vpop.f32.mrf.mxu1 }
 0x1d8   : > { %v2651_v10 = vpop.eup %2650  ;;  %v1230_v15 = vmul.f32 1.442695, %v1189_v9  ;;  %v1188_v16 = vsub.f32 0.0, %v3425_v5  ;;  %v3429_v18 = vadd.f32 %v2365_v59, %v3386_v31 }
 0x1d9   : > { %2664 = vrcp.f32 %v1277_v8  ;;  %v1276_v19 = vadd.f32 1.0, %v2651_v10  ;;  %v1071_v26 = vpop.f32.mrf.mxu1 }
 0x1da   : > { %v2653_v43 = vpop.eup %2652  ;;  %2666 = vpow2.f32 %v1230_v15  ;;  %v1228_v17 = vmul.f32 1.442695, %v1188_v16  ;;  %v1191_v60 = vsub.f32 0.0, %v3429_v18  ;;  %v3433_v20 = vadd.f32 %v3386_v31, %v1071_v26 }
 0x1db   : > { %2668 = vrcp.f32 %v1276_v19  ;;  %v1279_v21 = vadd.f32 1.0, %v2653_v43  ;;  %v2368_v23 = vpop.f32.mrf.mxu1 }
 0x1dc   : > { %v2655_v24 = vpop.eup %2654  ;;  %2670 = vpow2.f32 %v1228_v17  ;;  %v1234_v14 = vmul.f32 1.442695, %v1191_v60  ;;  %v1190_v22 = vsub.f32 0.0, %v3433_v20  ;;  %v3437_v11 = vadd.f32 %v2368_v23, %v3386_v31 }
 0x1dd   : > { %2672 = vrcp.f32 %v1279_v21  ;;  %v1278_v41 = vadd.f32 1.0, %v2655_v24  ;;  %v1081_v53 = vpop.f32.mrf.mxu1 }
 0x1de   : > { %v2657_v40 = vpop.eup %2656  ;;  %2674 = vpow2.f32 %v1234_v14  ;;  %v1232_v3 = vmul.f32 1.442695, %v1190_v22  ;;  %v1193_v25 = vsub.f32 0.0, %v3437_v11  ;;  %v3441_v30 = vadd.f32 %v3386_v31, %v1081_v53 }
 0x1df   : > { %2676 = vrcp.f32 %v1278_v41  ;;  %v1281_v1 = vadd.f32 1.0, %v2657_v40 }
 0x1e0   : > { %v2659_v36 = vpop.eup %2658  ;;  %2678 = vpow2.f32 %v1232_v3  ;;  %v1238_v56 = vmul.f32 1.442695, %v1193_v25  ;;  %v1192_v28 = vsub.f32 0.0, %v3441_v30  ;;  %v2371_v62 = vpop.f32.mrf.mxu1 }
 0x1e1   : > { %2680 = vrcp.f32 %v1281_v1  ;;  %v1280_v37 = vadd.f32 1.0, %v2659_v36  ;;  %v3445_v34 = vadd.f32 %v2371_v62, %v3386_v31 }
 0x1e2   : > { %v2661_v46 = vpop.eup %2660  ;;  %2682 = vpow2.f32 %v1238_v56  ;;  %v1236_v33 = vmul.f32 1.442695, %v1192_v28  ;;  %v1091_v39 = vpop.f32.mrf.mxu1 }
 0x1e3   : > { %2684 = vrcp.f32 %v1280_v37  ;;  %v1283_v35 = vadd.f32 1.0, %v2661_v46  ;;  %v1195_v47 = vsub.f32 0.0, %v3445_v34  ;;  %v3449_v2 = vadd.f32 %v3386_v31, %v1091_v39 }
 0x1e4   : > { %v2663_v13 = vpop.eup %2662  ;;  %2686 = vpow2.f32 %v1236_v33  ;;  %v2374_v42 = vpop.f32.mrf.mxu1 }
 0x1e5   : > { %v1282_v27 = vadd.f32 1.0, %v2663_v13  ;;  %v1242_v7 = vmul.f32 1.442695, %v1195_v47  ;;  %v1194_v48 = vsub.f32 0.0, %v3449_v2  ;;  %2688 = vrcp.f32 %v1283_v35 }
 0x1e6   : > { %v2665_v55 = vpop.eup %2664  ;;  %v3453_v29 = vadd.f32 %v2374_v42, %v3386_v31  ;;  %v1101_v49 = vpop.f32.mrf.mxu1 }
 0x1e7   : > { %v2667_v61 = vpop.eup %2666  ;;  %2690 = vrcp.f32 %v1282_v27  ;;  %v1240_v44 = vmul.f32 1.442695, %v1194_v48  ;;  %v3456_v6 = vadd.f32 %v3386_v31, %v1101_v49  ;;  %v1341_v19 = vmul.f32 %v2665_v55, %v3389_v32 }
 0x1e8   : > { %v2669_v52 = vpop.eup %2668  ;;  %v1285_v63 = vadd.f32 1.0, %v2667_v61  ;;  %2692 = vpow2.f32 %v1242_v7  ;;  %v1197_v4 = vsub.f32 0.0, %v3453_v29  ;;  %v2377_v9 = vpop.f32.mrf.mxu1 }
 0x1e9   : > { %v2671_v8 = vpop.eup %2670  ;;  %v1340_v59 = vmul.f32 %v2669_v52, %v3393_v51  ;;  %2694 = vpow2.f32 %v1240_v44  ;;  %v1196_v10 = vsub.f32 0.0, %v3456_v6  ;;  %v3462_v15 = vadd.f32 %v2377_v9, %v3386_v31 }
 0x1ea   : > { %v2673_v16 = vpop.eup %2672  ;;  %2696 = vrcp.f32 %v1285_v63  ;;  %v1284_v26 = vadd.f32 1.0, %v2671_v8  ;;  %v1246_v43 = vmul.f32 1.442695, %v1197_v4  ;;  %v1111_v17 = vpop.f32.mrf.mxu1 }
 0x1eb   : > { %v2675_v60 = vpop.eup %2674  ;;  %v1244_v21 = vmul.f32 1.442695, %v1196_v10  ;;  %v1199_v23 = vsub.f32 0.0, %v3462_v15  ;;  %v3467_v24 = vadd.f32 %v3386_v31, %v1111_v17  ;;  %1449 = vmatmul.mubr.f32.vlgmr.msra.gmra.mxu0 %v1340_v59  ;;  %2428 = vmatprep.mubr.f32.mxu1 %v1340_v59  ;;  %v1343_v25 = vmul.f32 %v2673_v16, %v3397_v38 }
 0x1ec   : > { %v2677_v51 = vpop.eup %2676  ;;  %2698 = vrcp.f32 %v1284_v26  ;;  %v1287_v14 = vadd.f32 1.0, %v2675_v60  ;;  %v2380_v22 = vpop.f32.mrf.mxu1  ;;  %2429 = vmatmul.mubr.f32.vlgmr.msra.gmra.mxu1 %v1341_v19  ;;  %1454 = vmatprep.mubr.f32.mxu0 %v2838_v12 }
 0x1ed   : > { %v2679_v32 = vpop.eup %2678  ;;  %v1342_v41 = vmul.f32 %v2677_v51, %v3401_v50  ;;  %2700 = vpow2.f32 %v1246_v43  ;;  %v1250_v53 = vmul.f32 1.442695, %v1199_v23  ;;  %v1198_v40 = vsub.f32 0.0, %v3467_v24 }
 0x1ee   : > { %v2681_v3 = vpop.eup %2680  ;;  %2702 = vrcp.f32 %v1287_v14  ;;  %v1286_v1 = vadd.f32 1.0, %v2679_v32  ;;  %v3474_v36 = vadd.f32 %v2380_v22, %v3386_v31  ;;  %v1121_v56 = vpop.f32.mrf.mxu1 }
 0x1ef   : > { %v2683_v28 = vpop.eup %2682  ;;  %2704 = vpow2.f32 %v1244_v21  ;;  %v1248_v62 = vmul.f32 1.442695, %v1198_v40  ;;  %v3477_v37 = vadd.f32 %v3386_v31, %v1121_v56  ;;  %1455 = vmatmul.mubr.f32.gmra.mxu0 %v1341_v19  ;;  %2431 = vmatprep.mubr.f32.mxu1 %v1342_v41  ;;  %v3487_v42 = vmul.f32 %v2681_v3, %v3405_v57 }
 0x1f0   : > { %v2685_v50 = vpop.eup %2684  ;;  %2706 = vrcp.f32 %v1286_v1  ;;  %v1289_v46 = vadd.f32 1.0, %v2683_v28  ;;  %v1201_v33 = vsub.f32 0.0, %v3474_v36  ;;  %v2383_v38 = vpop.f32.mrf.mxu1  ;;  %2432 = vmatmul.mubr.f32.gmra.mxu1 %v1343_v25  ;;  %1460 = vmatprep.mubr.f32.mxu0 %v2838_v12 }
 0x1f1   : > { %v2687_v39 = vpop.eup %2686  ;;  %v1344_v35 = vmul.f32 %v2685_v50, %v3409_v45  ;;  %2708 = vpow2.f32 %v1250_v53  ;;  %v1200_v47 = vsub.f32 0.0, %v3477_v37  ;;  %v3484_v13 = vadd.f32 %v2383_v38, %v3386_v31 }
 0x1f2   : > { %2710 = vrcp.f32 %v1289_v46  ;;  %v1288_v27 = vadd.f32 1.0, %v2687_v39  ;;  %v1254_v7 = vmul.f32 1.442695, %v1201_v33  ;;  %v1131_v48 = vpop.f32.mrf.mxu1  ;;  %v2689_v55 = vpop.eup %2688 }
 0x1f3   : > { %2712 = vpow2.f32 %v1248_v62  ;;  %v1252_v49 = vmul.f32 1.442695, %v1200_v47  ;;  %v1203_v61 = vsub.f32 0.0, %v3484_v13  ;;  %1461 = vmatmul.mubr.f32.gmra.mxu0 %v1342_v41  ;;  %2434 = vmatprep.mubr.f32.mxu1 %v1344_v35  ;;  %v3491_v44 = vadd.f32 %v3386_v31, %v1131_v48 }
 0x1f4   : > { %v2691_v45 = vpop.eup %2690  ;;  %2714 = vrcp.f32 %v1288_v27  ;;  %v2386_v52 = vpop.f32.mrf.mxu1  ;;  %2435 = vmatmul.mubr.f32.gmra.mxu1 %v3487_v42  ;;  %1466 = vmatprep.mubr.f32.mxu0 %v2838_v12  ;;  %v3502_v59 = vmul.f32 %v2689_v55, %v3413_v54 }
 0x1f5   : > { %v2693_v57 = vpop.eup %2692  ;;  %v3496_v63 = vmul.f32 %v2691_v45, %v3417_v58  ;;  %2716 = vpow2.f32 %v1254_v7  ;;  %v1258_v4 = vmul.f32 1.442695, %v1203_v61  ;;  %v3499_v9 = vadd.f32 %v2386_v52, %v3386_v31 }
 0x1f6   : > { %v2695_v8 = vpop.eup %2694  ;;  %v1291_v10 = vadd.f32 1.0, %v2693_v57  ;;  %2718 = vpow2.f32 %v1252_v49  ;;  %v1202_v16 = vsub.f32 0.0, %v3491_v44  ;;  %v1141_v19 = vpop.f32.mrf.mxu1 }
 0x1f7   : > { %v2697_v26 = vpop.eup %2696  ;;  %v1290_v43 = vadd.f32 1.0, %v2695_v8  ;;  %2720 = vpow2.f32 %v1258_v4  ;;  %v1205_v58 = vsub.f32 0.0, %v3499_v9  ;;  %v3507_v17 = vadd.f32 %v3386_v31, %v1141_v19  ;;  %1467 = vmatmul.mubr.f32.gmra.mxu0 %v1343_v25  ;;  %2437 = vmatprep.mubr.f32.mxu1 %v3496_v63 }
 0x1f8   : > { %2722 = vrcp.f32 %v1291_v10  ;;  %v1256_v60 = vmul.f32 1.442695, %v1202_v16  ;;  %v2389_v54 = vpop.f32.mrf.mxu1  ;;  %2438 = vmatmul.mubr.f32.gmra.mxu1 %v3502_v59  ;;  %1472 = vmatprep.mubr.f32.mxu0 %v2838_v12  ;;  %v3517_v32 = vmul.f32 %v2697_v26, %v3421_v0 }
 0x1f9   : > { %v2699_v21 = vpop.eup %2698  ;;  %2724 = vrcp.f32 %v1290_v43  ;;  %v1262_v23 = vmul.f32 1.442695, %v1205_v58  ;;  %v1204_v51 = vsub.f32 0.0, %v3507_v17  ;;  %v3514_v14 = vadd.f32 %v2389_v54, %v3386_v31 }
 0x1fa   : > { %v2701_v22 = vpop.eup %2700  ;;  %v3520_v41 = vmul.f32 %v2699_v21, %v3425_v5  ;;  %2726 = vpow2.f32 %v1256_v60  ;;  %v1151_v53 = vpop.f32.mrf.mxu1 }
 0x1fb   : > { %v2703_v40 = vpop.eup %2702  ;;  %v1293_v3 = vadd.f32 1.0, %v2701_v22  ;;  %2728 = vpow2.f32 %v1262_v23  ;;  %v1260_v25 = vmul.f32 1.442695, %v1204_v51  ;;  %v1207_v1 = vsub.f32 0.0, %v3514_v14  ;;  %1473 = vmatmul.mubr.f32.gmra.mxu0 %v1344_v35 }
 0x1fc   : > { %v2705_v56 = vpop.eup %2704  ;;  %v3524_v28 = vadd.f32 %v3386_v31, %v1151_v53  ;;  %v2392_v62 = vpop.f32.mrf.mxu1  ;;  %2440 = vmatprep.mubr.f32.mxu1 %v3520_v41  ;;  %1478 = vmatprep.mubr.f32.mxu0 %v2838_v12  ;;  %v3533_v38 = vmul.f32 %v2703_v40, %v3429_v18 }
 0x1fd   : > { %v2707_v0 = vpop.eup %2706  ;;  %2730 = vrcp.f32 %v1293_v3  ;;  %v1292_v5 = vadd.f32 1.0, %v2705_v56  ;;  %v1266_v50 = vmul.f32 1.442695, %v1207_v1  ;;  %v3529_v46 = vadd.f32 %v2392_v62, %v3386_v31  ;;  %2441 = vmatmul.mubr.f32.gmra.mxu1 %v3517_v32 }
 0x1fe   : > { %v2709_v33 = vpop.eup %2708  ;;  %v3536_v39 = vmul.f32 %v2707_v0, %v3433_v20  ;;  %2732 = vpow2.f32 %v1260_v25  ;;  %v1206_v35 = vsub.f32 0.0, %v3524_v28  ;;  %v1161_v47 = vpop.f32.mrf.mxu1 }
 0x1ff   : > { %v2711_v27 = vpop.eup %2710  ;;  %2734 = vrcp.f32 %v1292_v5  ;;  %v1295_v7 = vadd.f32 1.0, %v2709_v33  ;;  %v1209_v48 = vsub.f32 0.0, %v3529_v46  ;;  %v3541_v55 = vadd.f32 %v3386_v31, %v1161_v47  ;;  %1479 = vmatmul.mubr.f32.gmra.mxu0 %v3487_v42 }
 0x200   : > { %v2713_v49 = vpop.eup %2712  ;;  %2736 = vpow2.f32 %v1266_v50  ;;  %v1264_v18 = vmul.f32 1.442695, %v1206_v35  ;;  %v2395_v61 = vpop.f32.mrf.mxu1  ;;  %2443 = vmatprep.mubr.f32.mxu1 %v3536_v39  ;;  %1484 = vmatprep.mubr.f32.mxu0 %v2838_v12  ;;  %v3555_v19 = vmul.f32 %v2711_v27, %v3437_v11 }
 0x201   : > { %v2715_v20 = vpop.eup %2714  ;;  %2738 = vrcp.f32 %v1295_v7  ;;  %v1294_v45 = vadd.f32 1.0, %v2713_v49  ;;  %v1270_v52 = vmul.f32 1.442695, %v1209_v48  ;;  %v1208_v57 = vsub.f32 0.0, %v3541_v55  ;;  %2444 = vmatmul.mubr.f32.gmra.mxu1 %v3533_v38 }
 0x202   : > { %v2717_v4 = vpop.eup %2716  ;;  %v3549_v8 = vmul.f32 %v2715_v20, %v3441_v30  ;;  %2740 = vpow2.f32 %v1264_v18  ;;  %v3552_v42 = vadd.f32 %v2395_v61, %v3386_v31  ;;  %v1171_v10 = vpop.f32.mrf.mxu1 }
 0x203   : > { %v2719_v16 = vpop.eup %2718  ;;  %2742 = vrcp.f32 %v1294_v45  ;;  %v1297_v26 = vadd.f32 1.0, %v2717_v4  ;;  %v3558_v43 = vadd.f32 %v3386_v31, %v1171_v10  ;;  %1485 = vmatmul.mubr.f32.gmra.mxu0 %v3496_v63  ;;  %v1268_v30 = vmul.f32 1.442695, %v1208_v57 }
 0x204   : > { %v2721_v58 = vpop.eup %2720  ;;  %v1296_v60 = vadd.f32 1.0, %v2719_v16  ;;  %2744 = vpow2.f32 %v1270_v52  ;;  %v1211_v54 = vsub.f32 0.0, %v3552_v42  ;;  %2446 = vmatprep.mubr.f32.mxu1 %v3549_v8  ;;  %1490 = vmatprep.mubr.f32.mxu0 %v2838_v12 }
 0x205   : > { %v2723_v21 = vpop.eup %2722  ;;  %2746 = vrcp.f32 %v1297_v26  ;;  %v1299_v11 = vadd.f32 1.0, %v2721_v58  ;;  %v1210_v23 = vsub.f32 0.0, %v3558_v43  ;;  %2447 = vmatmul.mubr.f32.gmra.mxu1 %v3555_v19 }
 0x206   : > { %v2725_v31 = vpop.eup %2724  ;;  %2748 = vrcp.f32 %v1296_v60  ;;  %v1274_v63 = vmul.f32 1.442695, %v1211_v54  ;;  %v3571_v40 = vmul.f32 %v2723_v21, %v3445_v34 }
 0x207   : > { %v2727_v51 = vpop.eup %2726  ;;  %v3567_v22 = vmul.f32 %v2725_v31, %v3449_v2  ;;  %2750 = vrcp.f32 %v1299_v11  ;;  %1491 = vmatmul.mubr.f32.gmra.mxu0 %v3502_v59  ;;  %v1272_v25 = vmul.f32 1.442695, %v1210_v23 }
 0x208   : > { %v2729_v53 = vpop.eup %2728  ;;  %v1298_v3 = vadd.f32 1.0, %v2727_v51  ;;  %2752 = vpow2.f32 %v1268_v30  ;;  %1496 = vmatprep.mubr.f32.mxu0 %v2838_v12 }
 0x209   : > { %v1301_v1 = vadd.f32 1.0, %v2729_v53  ;;  %2754 = vpow2.f32 %v1274_v63  ;;  %2449 = vmatprep.mubr.f32.mxu1 %v3567_v22 }
 0x20a   : > { %v2731_v56 = vpop.eup %2730  ;;  %2756 = vrcp.f32 %v1298_v3  ;;  %2450 = vmatmul.mubr.f32.gmra.mxu1 %v3571_v40 }
 0x20b   : > { %v2733_v2 = vpop.eup %2732  ;;  %1497 = vmatmul.mubr.f32.gmra.mxu0 %v3520_v41  ;;  %2758 = vpow2.f32 %v1272_v25  ;;  %v3582_v50 = vmul.f32 %v2731_v56, %v3453_v29 }
 0x20c   : > { %v2735_v59 = vpop.eup %2734  ;;  %v1300_v62 = vadd.f32 1.0, %v2733_v2  ;;  %1502 = vmatprep.mubr.f32.mxu0 %v2838_v12  ;;  %2760 = vrcp.f32 %v1301_v1 }
 0x20d   : > { %v2737_v34 = vpop.eup %2736  ;;  %v3579_v0 = vmul.f32 %v2735_v59, %v3456_v6 }
 0x20e   : > { %v2739_v5 = vpop.eup %2738  ;;  %2762 = vrcp.f32 %v1300_v62  ;;  %v1303_v33 = vadd.f32 1.0, %v2737_v34 }
 0x20f   : > { %v2741_v35 = vpop.eup %2740  ;;  %2452 = vmatprep.mubr.f32.mxu1 %v3579_v0  ;;  %1503 = vmatmul.mubr.f32.gmra.mxu0 %v3517_v32  ;;  %v3592_v7 = vmul.f32 %v2739_v5, %v3462_v15 }
 0x210   : > { %v2743_v41 = vpop.eup %2742  ;;  %v1302_v47 = vadd.f32 1.0, %v2741_v35  ;;  %2453 = vmatmul.mubr.f32.gmra.mxu1 %v3582_v50  ;;  %1508 = vmatprep.mubr.f32.mxu0 %v2838_v12  ;;  %2764 = vrcp.f32 %v1303_v33 }
 0x211   : > { %v2745_v6 = vpop.eup %2744  ;;  %v3589_v27 = vmul.f32 %v2743_v41, %v3467_v24 }
 0x212   : > { %v2747_v29 = vpop.eup %2746  ;;  %2766 = vrcp.f32 %v1302_v47  ;;  %v1305_v49 = vadd.f32 1.0, %v2745_v6 }
 0x213   : > { %v2749_v48 = vpop.eup %2748  ;;  %2455 = vmatprep.mubr.f32.mxu1 %v3589_v27  ;;  %1509 = vmatmul.mubr.f32.gmra.mxu0 %v3536_v39  ;;  %v1361_v20 = vmul.f32 %v2747_v29, %v3474_v36 }
 0x214   : > { %v2751_v32 = vpop.eup %2750  ;;  %v1360_v18 = vmul.f32 %v2749_v48, %v3477_v37  ;;  %2456 = vmatmul.mubr.f32.gmra.mxu1 %v3592_v7  ;;  %1514 = vmatprep.mubr.f32.mxu0 %v2838_v12  ;;  %2768 = vrcp.f32 %v1305_v49 }
 0x215   : > { %v2753_v24 = vpop.eup %2752  ;;  %v1363_v4 = vmul.f32 %v2751_v32, %v3484_v13 }
 0x216   : > { %v2755_v61 = vpop.eup %2754  ;;  %v1304_v15 = vadd.f32 1.0, %v2753_v24  ;;  %2458 = vmatprep.mubr.f32.mxu1 %v1360_v18 }
 0x217   : > { %v2757_v45 = vpop.eup %2756  ;;  %v1307_v52 = vadd.f32 1.0, %v2755_v61  ;;  %1515 = vmatmul.mubr.f32.gmra.mxu0 %v3533_v38 }
 0x218   : > { %v1362_v39 = vmul.f32 %v2757_v45, %v3491_v44  ;;  %2770 = vrcp.f32 %v1304_v15  ;;  %2459 = vmatmul.mubr.f32.gmra.mxu1 %v1361_v20  ;;  %1520 = vmatprep.mubr.f32.mxu0 %v2838_v12  ;;  %v2759_v37 = vpop.eup %2758 }
 0x219   : > { %v2761_v57 = vpop.eup %2760  ;;  %v1306_v10 = vadd.f32 1.0, %v2759_v37  ;;  %2772 = vrcp.f32 %v1307_v52 }
 0x21a   : > { %2461 = vmatprep.mubr.f32.mxu1 %v1362_v39  ;;  %v1365_v38 = vmul.f32 %v2761_v57, %v3499_v9 }
 0x21b   : > { %v2763_v36 = vpop.eup %2762  ;;  %1521 = vmatmul.mubr.f32.gmra.mxu0 %v3549_v8  ;;  %2774 = vrcp.f32 %v1306_v10 }
 0x21c   : > { %v1364_v16 = vmul.f32 %v2763_v36, %v3507_v17  ;;  %2462 = vmatmul.mubr.f32.gmra.mxu1 %v1363_v4  ;;  %1526 = vmatprep.mubr.f32.mxu0 %v2838_v12 }
 0x21d   : > { %v2765_v44 = vpop.eup %2764 }
 0x21e   : > { %2464 = vmatprep.mubr.f32.mxu1 %v1364_v16  ;;  %v1367_v8 = vmul.f32 %v2765_v44, %v3514_v14 }
 0x21f   : > { %v2767_v26 = vpop.eup %2766  ;;  %1527 = vmatmul.mubr.f32.gmra.mxu0 %v3555_v19 }
 0x220   : > { %v1366_v13 = vmul.f32 %v2767_v26, %v3524_v28  ;;  %2465 = vmatmul.mubr.f32.gmra.mxu1 %v1365_v38  ;;  %1532 = vmatprep.mubr.f32.mxu0 %v2838_v12 }
 0x221   : > { %v2769_v17 = vpop.eup %2768 }
 0x222   : > { %2467 = vmatprep.mubr.f32.mxu1 %v1366_v13  ;;  %v1369_v60 = vmul.f32 %v2769_v17, %v3529_v46  ;;  %v3645_v46 = vld [vmem:[%s3943_s3 + $0x180] ss:$0 sm:$0xff] }
 0x223   : > { %1533 = vmatmul.mubr.f32.gmra.mxu0 %v3567_v22 }
 0x224   : > { %2468 = vmatmul.mubr.f32.gmra.mxu1 %v1367_v8  ;;  %1538 = vmatprep.mubr.f32.mxu0 %v2838_v12 }
 0x225   : > { %v2771_v58 = vpop.eup %2770 }
 0x226   : > { %v1368_v9 = vmul.f32 %v2771_v58, %v3541_v55  ;;  %v2773_v28 = vpop.eup %2772  ;;  %v3651_v55 = vld [vmem:[%s3943_s3 + $0x190] ss:$0 sm:$0xff] }
 0x227   : > { %1539 = vmatmul.mubr.f32.gmra.mxu0 %v3571_v40  ;;  %v1371_v30 = vmul.f32 %v2773_v28, %v3552_v42 }
 0x228   : > { %2470 = vmatprep.mubr.f32.mxu1 %v1368_v9  ;;  %1544 = vmatprep.mubr.f32.mxu0 %v2838_v12  ;;  %v2775_v19 = vpop.eup %2774 }
 0x229   : > { %2471 = vmatmul.mubr.f32.gmra.mxu1 %v1369_v60  ;;  %v1370_v14 = vmul.f32 %v2775_v19, %v3558_v43 }
 0x22b   : > { %1545 = vmatmul.mubr.f32.gmra.mxu0 %v3579_v0  ;;  %2473 = vmatprep.mubr.f32.mxu1 %v1370_v14 }
 0x22c   : > { %1550 = vmatprep.mubr.f32.mxu0 %v2838_v12 }
 0x22d   : > { %2474 = vmatmul.mubr.f32.gmra.mxu1 %v1371_v30 }
 0x22f   : > { %1551 = vmatmul.mubr.f32.gmra.mxu0 %v3582_v50 }
 0x230   : > { %1556 = vmatprep.mubr.f32.mxu0 %v2838_v12 }
 0x233   : > { %1557 = vmatmul.mubr.f32.gmra.mxu0 %v3589_v27 }
 0x234   : > { %1562 = vmatprep.mubr.f32.mxu0 %v2838_v12 }
 0x237   : > { %1563 = vmatmul.mubr.f32.gmra.mxu0 %v3592_v7 }
 0x238   : > { %1568 = vmatprep.mubr.f32.mxu0 %v2838_v12 }
 0x23b   : > { %1569 = vmatmul.mubr.f32.gmra.mxu0 %v1360_v18 }
 0x23c   : > { %1574 = vmatprep.mubr.f32.mxu0 %v2838_v12 }
 0x23f   : > { %1575 = vmatmul.mubr.f32.gmra.mxu0 %v1361_v20 }
 0x240   : > { %1580 = vmatprep.mubr.f32.mxu0 %v2838_v12 }
 0x243   : > { %1581 = vmatmul.mubr.f32.gmra.mxu0 %v1362_v39 }
 0x244   : > { %1586 = vmatprep.mubr.f32.mxu0 %v2838_v12 }
 0x247   : > { %1587 = vmatmul.mubr.f32.gmra.mxu0 %v1363_v4 }
 0x248   : > { %1592 = vmatprep.mubr.f32.mxu0 %v2838_v12 }
 0x24b   : > { %1593 = vmatmul.mubr.f32.gmra.mxu0 %v1364_v16 }
 0x24c   : > { %1598 = vmatprep.mubr.f32.mxu0 %v2838_v12 }
 0x24f   : > { %1599 = vmatmul.mubr.f32.gmra.mxu0 %v1365_v38 }
 0x250   : > { %1604 = vmatprep.mubr.f32.mxu0 %v2838_v12 }
 0x253   : > { %1605 = vmatmul.mubr.f32.gmra.mxu0 %v1366_v13 }
 0x254   : > { %1610 = vmatprep.mubr.f32.mxu0 %v2838_v12 }
 0x257   : > { %1611 = vmatmul.mubr.f32.gmra.mxu0 %v1367_v8 }
 0x258   : > { %1616 = vmatprep.mubr.f32.mxu0 %v2838_v12 }
 0x25b   : > { %1617 = vmatmul.mubr.f32.gmra.mxu0 %v1368_v9 }
 0x25c   : > { %1622 = vmatprep.mubr.f32.mxu0 %v2838_v12 }
 0x25f   : > { %1623 = vmatmul.mubr.f32.gmra.mxu0 %v1369_v60 }
 0x260   : > { %1628 = vmatprep.mubr.f32.mxu0 %v2838_v12 }
 0x263   : > { %1629 = vmatmul.mubr.f32.gmra.mxu0 %v1370_v14 }
 0x264   : > { %1634 = vmatprep.mubr.f32.mxu0 %v2838_v12  ;;  %v3656_v12 = vld [vmem:[%s3943_s3 + $0x188] ss:$0 sm:$0xff] }
 0x267   : > { %1635 = vmatmul.mubr.f32.gmra.mxu0 %v1371_v30 }
 0x2ab   : > { %v1450_v42 = vpop.f32.mrf.mxu0 }
 0x2ac   : > { %v1451_v43 = vadd.f32 %v3645_v46, %v1450_v42  ;;  %v2430_v54 = vpop.f32.mrf.mxu1 }
 0x2ad   : > { %v1713_v21 = vadd.f32 %v2430_v54, %v3651_v55  ;;  %v1452_v11 = vpop.f32.mrf.mxu0 }
 0x2ae   : > { %1866 = vst [vmem:[%s3665_s7] sm:$0xff] %v1451_v43  ;;  %v1453_v23 = vadd.f32 %v3656_v12, %v1452_v11  ;;  %v1707_v31 = vpop.f32.mrf.mxu1 }
 0x2af   : > { %1902 = vst.msk [vmem:[%s3662_s25 + $0x18] sm:$0xff] %vm1899_vm2, %v1713_v21  ;;  %v1708_v63 = vadd.f32 %v3651_v55, %v1707_v31  ;;  %v1456_v51 = vpop.f32.mrf.mxu0 }
 0x2b0   : > { %1898 = vst [vmem:[%s3662_s25] sm:$0xff] %v1453_v23  ;;  %v1457_v22 = vadd.f32 %v3645_v46, %v1456_v51  ;;  %v2433_v53 = vpop.f32.mrf.mxu1 }
 0x2b1   : > { %1900 = vst.msk [vmem:[%s3662_s25 + $0x8] sm:$0xff] %vm1899_vm2, %v1708_v63  ;;  %v1723_v40 = vadd.f32 %v2433_v53, %v3651_v55  ;;  %v1458_v3 = vpop.f32.mrf.mxu0 }
 0x2b2   : > { %1867 = vst [vmem:[%s3665_s7 + $0x8] sm:$0xff] %v1457_v22  ;;  %v1459_v25 = vadd.f32 %v3656_v12, %v1458_v3  ;;  %v1717_v1 = vpop.f32.mrf.mxu1 }
 0x2b3   : > { %1906 = vst.msk [vmem:[%s3662_s25 + $0x38] sm:$0xff] %vm1899_vm2, %v1723_v40  ;;  %v1718_v56 = vadd.f32 %v3651_v55, %v1717_v1  ;;  %v1462_v2 = vpop.f32.mrf.mxu0 }
 0x2b4   : > { %1901 = vst [vmem:[%s3662_s25 + $0x10] sm:$0xff] %v1459_v25  ;;  %v1463_v59 = vadd.f32 %v3645_v46, %v1462_v2  ;;  %v2436_v62 = vpop.f32.mrf.mxu1 }
 0x2b5   : > { %1904 = vst.msk [vmem:[%s3662_s25 + $0x28] sm:$0xff] %vm1899_vm2, %v1718_v56  ;;  %v1733_v34 = vadd.f32 %v2436_v62, %v3651_v55  ;;  %v1464_v0 = vpop.f32.mrf.mxu0 }
 0x2b6   : > { %1868 = vst [vmem:[%s3665_s7 + $0x10] sm:$0xff] %v1463_v59  ;;  %v1465_v5 = vadd.f32 %v3656_v12, %v1464_v0  ;;  %v1727_v50 = vpop.f32.mrf.mxu1 }
 0x2b7   : > { %1910 = vst.msk [vmem:[%s3662_s25 + $0x58] sm:$0xff] %vm1899_vm2, %v1733_v34  ;;  %v1728_v33 = vadd.f32 %v3651_v55, %v1727_v50  ;;  %v1468_v35 = vpop.f32.mrf.mxu0 }
 0x2b8   : > { %1903 = vst [vmem:[%s3662_s25 + $0x20] sm:$0xff] %v1465_v5  ;;  %v1469_v41 = vadd.f32 %v3645_v46, %v1468_v35  ;;  %v2439_v47 = vpop.f32.mrf.mxu1 }
 0x2b9   : > { %1908 = vst.msk [vmem:[%s3662_s25 + $0x48] sm:$0xff] %vm1899_vm2, %v1728_v33  ;;  %v1743_v6 = vadd.f32 %v2439_v47, %v3651_v55  ;;  %v1470_v27 = vpop.f32.mrf.mxu0 }
 0x2ba   : > { %1869 = vst [vmem:[%s3665_s7 + $0x18] sm:$0xff] %v1469_v41  ;;  %v1471_v29 = vadd.f32 %v3656_v12, %v1470_v27  ;;  %v1737_v7 = vpop.f32.mrf.mxu1 }
 0x2bb   : > { %1914 = vst.msk [vmem:[%s3662_s25 + $0x78] sm:$0xff] %vm1899_vm2, %v1743_v6  ;;  %v1738_v48 = vadd.f32 %v3651_v55, %v1737_v7  ;;  %v1474_v49 = vpop.f32.mrf.mxu0 }
 0x2bc   : > { %1905 = vst [vmem:[%s3662_s25 + $0x30] sm:$0xff] %v1471_v29  ;;  %v1475_v32 = vadd.f32 %v3645_v46, %v1474_v49 }
 0x2bd   : > { %1912 = vst.msk [vmem:[%s3662_s25 + $0x68] sm:$0xff] %vm1899_vm2, %v1738_v48  ;;  %v2442_v18 = vpop.f32.mrf.mxu1  ;;  %v1476_v24 = vpop.f32.mrf.mxu0 }
 0x2be   : > { %1870 = vst [vmem:[%s3665_s7 + $0x20] sm:$0xff] %v1475_v32  ;;  %v1753_v61 = vadd.f32 %v2442_v18, %v3651_v55  ;;  %v1477_v20 = vadd.f32 %v3656_v12, %v1476_v24 }
 0x2bf   : > { %v1747_v15 = vpop.f32.mrf.mxu1  ;;  %v1480_v45 = vpop.f32.mrf.mxu0 }
 0x2c0   : > { %1918 = vst.msk [vmem:[%s3662_s25 + $0x98] sm:$0xff] %vm1899_vm2, %v1753_v61  ;;  %1907 = vst [vmem:[%s3662_s25 + $0x40] sm:$0xff] %v1477_v20  ;;  %v1748_v52 = vadd.f32 %v3651_v55, %v1747_v15  ;;  %v1481_v39 = vadd.f32 %v3645_v46, %v1480_v45 }
 0x2c1   : > { %v2445_v37 = vpop.f32.mrf.mxu1  ;;  %v1482_v57 = vpop.f32.mrf.mxu0 }
 0x2c2   : > { %1916 = vst.msk [vmem:[%s3662_s25 + $0x88] sm:$0xff] %vm1899_vm2, %v1748_v52  ;;  %1871 = vst [vmem:[%s3665_s7 + $0x28] sm:$0xff] %v1481_v39  ;;  %v1763_v4 = vadd.f32 %v2445_v37, %v3651_v55  ;;  %v1483_v10 = vadd.f32 %v3656_v12, %v1482_v57 }
 0x2c3   : > { %v1757_v36 = vpop.f32.mrf.mxu1  ;;  %v1486_v16 = vpop.f32.mrf.mxu0 }
 0x2c4   : > { %1922 = vst.msk [vmem:[%s3662_s25 + $0xb8] sm:$0xff] %vm1899_vm2, %v1763_v4  ;;  %1909 = vst [vmem:[%s3662_s25 + $0x50] sm:$0xff] %v1483_v10  ;;  %v1758_v44 = vadd.f32 %v3651_v55, %v1757_v36  ;;  %v1487_v38 = vadd.f32 %v3645_v46, %v1486_v16 }
 0x2c5   : > { %v2448_v26 = vpop.f32.mrf.mxu1  ;;  %v1488_v13 = vpop.f32.mrf.mxu0 }
 0x2c6   : > { %1920 = vst.msk [vmem:[%s3662_s25 + $0xa8] sm:$0xff] %vm1899_vm2, %v1758_v44  ;;  %1872 = vst [vmem:[%s3665_s7 + $0x30] sm:$0xff] %v1487_v38  ;;  %v1773_v8 = vadd.f32 %v2448_v26, %v3651_v55  ;;  %v1489_v17 = vadd.f32 %v3656_v12, %v1488_v13 }
 0x2c7   : > { %v1767_v58 = vpop.f32.mrf.mxu1  ;;  %v1492_v9 = vpop.f32.mrf.mxu0 }
 0x2c8   : > { %1926 = vst.msk [vmem:[%s3662_s25 + $0xd8] sm:$0xff] %vm1899_vm2, %v1773_v8  ;;  %1911 = vst [vmem:[%s3662_s25 + $0x60] sm:$0xff] %v1489_v17  ;;  %v1768_v60 = vadd.f32 %v3651_v55, %v1767_v58  ;;  %v1493_v28 = vadd.f32 %v3645_v46, %v1492_v9 }
 0x2c9   : > { %v1494_v19 = vpop.f32.mrf.mxu0 }
 0x2ca   : > { %1924 = vst.msk [vmem:[%s3662_s25 + $0xc8] sm:$0xff] %vm1899_vm2, %v1768_v60  ;;  %1873 = vst [vmem:[%s3665_s7 + $0x38] sm:$0xff] %v1493_v28  ;;  %v2451_v14 = vpop.f32.mrf.mxu1  ;;  %v1495_v30 = vadd.f32 %v3656_v12, %v1494_v19 }
 0x2cb   : > { %v1783_v42 = vadd.f32 %v2451_v14, %v3651_v55  ;;  %v1498_v43 = vpop.f32.mrf.mxu0 }
 0x2cc   : > { %1913 = vst [vmem:[%s3662_s25 + $0x70] sm:$0xff] %v1495_v30  ;;  %v1777_v54 = vpop.f32.mrf.mxu1  ;;  %v1499_v21 = vadd.f32 %v3645_v46, %v1498_v43 }
 0x2cd   : > { %1930 = vst.msk [vmem:[%s3662_s25 + $0xf8] sm:$0xff] %vm1899_vm2, %v1783_v42  ;;  %v1778_v11 = vadd.f32 %v3651_v55, %v1777_v54  ;;  %v1500_v23 = vpop.f32.mrf.mxu0 }
 0x2ce   : > { %1874 = vst [vmem:[%s3665_s7 + $0x40] sm:$0xff] %v1499_v21  ;;  %v1501_v31 = vadd.f32 %v3656_v12, %v1500_v23 }
 0x2cf   : > { %1928 = vst.msk [vmem:[%s3662_s25 + $0xe8] sm:$0xff] %vm1899_vm2, %v1778_v11  ;;  %v1504_v63 = vpop.f32.mrf.mxu0 }
 0x2d0   : > { %v2454_v51 = vpop.f32.mrf.mxu1  ;;  %1915 = vst [vmem:[%s3662_s25 + $0x80] sm:$0xff] %v1501_v31  ;;  %v1505_v22 = vadd.f32 %v3645_v46, %v1504_v63 }
 0x2d1   : > { %v1793_v53 = vadd.f32 %v2454_v51, %v3651_v55  ;;  %v1506_v40 = vpop.f32.mrf.mxu0 }
 0x2d2   : > { %v1787_v3 = vpop.f32.mrf.mxu1  ;;  %1875 = vst [vmem:[%s3665_s7 + $0x48] sm:$0xff] %v1505_v22  ;;  %v1507_v25 = vadd.f32 %v3656_v12, %v1506_v40 }
 0x2d3   : > { %1934 = vst.msk [vmem:[%s3662_s25 + $0x118] sm:$0xff] %vm1899_vm2, %v1793_v53  ;;  %v1788_v1 = vadd.f32 %v3651_v55, %v1787_v3  ;;  %v1510_v56 = vpop.f32.mrf.mxu0 }
 0x2d4   : > { %v2457_v2 = vpop.f32.mrf.mxu1  ;;  %1917 = vst [vmem:[%s3662_s25 + $0x90] sm:$0xff] %v1507_v25  ;;  %v1511_v59 = vadd.f32 %v3645_v46, %v1510_v56 }
 0x2d5   : > { %1932 = vst.msk [vmem:[%s3662_s25 + $0x108] sm:$0xff] %vm1899_vm2, %v1788_v1  ;;  %v1803_v62 = vadd.f32 %v2457_v2, %v3651_v55  ;;  %v1512_v34 = vpop.f32.mrf.mxu0 }
 0x2d6   : > { %v1797_v0 = vpop.f32.mrf.mxu1  ;;  %1876 = vst [vmem:[%s3665_s7 + $0x50] sm:$0xff] %v1511_v59  ;;  %v1513_v5 = vadd.f32 %v3656_v12, %v1512_v34 }
 0x2d7   : > { %1938 = vst.msk [vmem:[%s3662_s25 + $0x138] sm:$0xff] %vm1899_vm2, %v1803_v62  ;;  %v1798_v50 = vadd.f32 %v3651_v55, %v1797_v0  ;;  %v1516_v33 = vpop.f32.mrf.mxu0 }
 0x2d8   : > { %v2460_v35 = vpop.f32.mrf.mxu1  ;;  %1919 = vst [vmem:[%s3662_s25 + $0xa0] sm:$0xff] %v1513_v5  ;;  %v1517_v41 = vadd.f32 %v3645_v46, %v1516_v33 }
 0x2d9   : > { %1936 = vst.msk [vmem:[%s3662_s25 + $0x128] sm:$0xff] %vm1899_vm2, %v1798_v50  ;;  %v1813_v47 = vadd.f32 %v2460_v35, %v3651_v55  ;;  %v1518_v6 = vpop.f32.mrf.mxu0 }
 0x2da   : > { %v1807_v27 = vpop.f32.mrf.mxu1  ;;  %1877 = vst [vmem:[%s3665_s7 + $0x58] sm:$0xff] %v1517_v41  ;;  %v1519_v29 = vadd.f32 %v3656_v12, %v1518_v6 }
 0x2db   : > { %1942 = vst.msk [vmem:[%s3662_s25 + $0x158] sm:$0xff] %vm1899_vm2, %v1813_v47  ;;  %v1808_v7 = vadd.f32 %v3651_v55, %v1807_v27  ;;  %v1522_v48 = vpop.f32.mrf.mxu0 }
 0x2dc   : > { %v2463_v49 = vpop.f32.mrf.mxu1  ;;  %1921 = vst [vmem:[%s3662_s25 + $0xb0] sm:$0xff] %v1519_v29  ;;  %v1523_v32 = vadd.f32 %v3645_v46, %v1522_v48 }
 0x2dd   : > { %1940 = vst.msk [vmem:[%s3662_s25 + $0x148] sm:$0xff] %vm1899_vm2, %v1808_v7  ;;  %v1823_v18 = vadd.f32 %v2463_v49, %v3651_v55  ;;  %v1524_v24 = vpop.f32.mrf.mxu0 }
 0x2de   : > { %v1817_v61 = vpop.f32.mrf.mxu1  ;;  %1878 = vst [vmem:[%s3665_s7 + $0x60] sm:$0xff] %v1523_v32  ;;  %v1525_v20 = vadd.f32 %v3656_v12, %v1524_v24 }
 0x2df   : > { %1946 = vst.msk [vmem:[%s3662_s25 + $0x178] sm:$0xff] %vm1899_vm2, %v1823_v18  ;;  %v1818_v15 = vadd.f32 %v3651_v55, %v1817_v61  ;;  %v1528_v45 = vpop.f32.mrf.mxu0 }
 0x2e0   : > { %v2466_v52 = vpop.f32.mrf.mxu1  ;;  %1923 = vst [vmem:[%s3662_s25 + $0xc0] sm:$0xff] %v1525_v20  ;;  %v1529_v39 = vadd.f32 %v3645_v46, %v1528_v45 }
 0x2e1   : > { %1944 = vst.msk [vmem:[%s3662_s25 + $0x168] sm:$0xff] %vm1899_vm2, %v1818_v15  ;;  %v1833_v37 = vadd.f32 %v2466_v52, %v3651_v55  ;;  %v1530_v57 = vpop.f32.mrf.mxu0 }
 0x2e2   : > { %v1827_v4 = vpop.f32.mrf.mxu1  ;;  %1879 = vst [vmem:[%s3665_s7 + $0x68] sm:$0xff] %v1529_v39  ;;  %v1531_v10 = vadd.f32 %v3656_v12, %v1530_v57 }
 0x2e3   : > { %1950 = vst.msk [vmem:[%s3662_s25 + $0x198] sm:$0xff] %vm1899_vm2, %v1833_v37  ;;  %v1828_v36 = vadd.f32 %v3651_v55, %v1827_v4  ;;  %v1534_v16 = vpop.f32.mrf.mxu0 }
 0x2e4   : > { %v2469_v44 = vpop.f32.mrf.mxu1  ;;  %1925 = vst [vmem:[%s3662_s25 + $0xd0] sm:$0xff] %v1531_v10  ;;  %v1535_v38 = vadd.f32 %v3645_v46, %v1534_v16 }
 0x2e5   : > { %1948 = vst.msk [vmem:[%s3662_s25 + $0x188] sm:$0xff] %vm1899_vm2, %v1828_v36  ;;  %v1843_v26 = vadd.f32 %v2469_v44, %v3651_v55  ;;  %v1536_v13 = vpop.f32.mrf.mxu0 }
 0x2e6   : > { %v1837_v8 = vpop.f32.mrf.mxu1  ;;  %1880 = vst [vmem:[%s3665_s7 + $0x70] sm:$0xff] %v1535_v38  ;;  %v1537_v17 = vadd.f32 %v3656_v12, %v1536_v13 }
 0x2e7   : > { %1954 = vst.msk [vmem:[%s3662_s25 + $0x1b8] sm:$0xff] %vm1899_vm2, %v1843_v26  ;;  %v1838_v58 = vadd.f32 %v3651_v55, %v1837_v8  ;;  %v1540_v9 = vpop.f32.mrf.mxu0 }
 0x2e8   : > { %1927 = vst [vmem:[%s3662_s25 + $0xe0] sm:$0xff] %v1537_v17  ;;  %v1541_v60 = vadd.f32 %v3645_v46, %v1540_v9 }
 0x2e9   : > { %1952 = vst.msk [vmem:[%s3662_s25 + $0x1a8] sm:$0xff] %vm1899_vm2, %v1838_v58  ;;  %v2472_v28 = vpop.f32.mrf.mxu1  ;;  %v1542_v19 = vpop.f32.mrf.mxu0 }
 0x2ea   : > { %v1853_v14 = vadd.f32 %v2472_v28, %v3651_v55  ;;  %1881 = vst [vmem:[%s3665_s7 + $0x78] sm:$0xff] %v1541_v60  ;;  %v1543_v30 = vadd.f32 %v3656_v12, %v1542_v19 }
 0x2eb   : > { %v1847_v42 = vpop.f32.mrf.mxu1  ;;  %v1546_v43 = vpop.f32.mrf.mxu0 }
 0x2ec   : > { %1958 = vst.msk [vmem:[%s3662_s25 + $0x1d8] sm:$0xff] %vm1899_vm2, %v1853_v14  ;;  %v1848_v54 = vadd.f32 %v3651_v55, %v1847_v42  ;;  %1929 = vst [vmem:[%s3662_s25 + $0xf0] sm:$0xff] %v1543_v30  ;;  %v1547_v21 = vadd.f32 %v3645_v46, %v1546_v43 }
 0x2ed   : > { %v2475_v11 = vpop.f32.mrf.mxu1  ;;  %v1548_v23 = vpop.f32.mrf.mxu0 }
 0x2ee   : > { %1956 = vst.msk [vmem:[%s3662_s25 + $0x1c8] sm:$0xff] %vm1899_vm2, %v1848_v54  ;;  %v1863_v31 = vadd.f32 %v2475_v11, %v3651_v55  ;;  %1882 = vst [vmem:[%s3665_s7 + $0x80] sm:$0xff] %v1547_v21  ;;  %v1549_v63 = vadd.f32 %v3656_v12, %v1548_v23 }
 0x2ef   : > { %v1857_v51 = vpop.f32.mrf.mxu1  ;;  %v1552_v22 = vpop.f32.mrf.mxu0 }
 0x2f0   : > { %1962 = vst.msk [vmem:[%s3662_s25 + $0x1f8] sm:$0xff] %vm1899_vm2, %v1863_v31  ;;  %v1858_v53 = vadd.f32 %v3651_v55, %v1857_v51  ;;  %1931 = vst [vmem:[%s3662_s25 + $0x100] sm:$0xff] %v1549_v63  ;;  %v1553_v40 = vadd.f32 %v3645_v46, %v1552_v22 }
 0x2f1   : > { %v1554_v3 = vpop.f32.mrf.mxu0 }
 0x2f2   : > { %1960 = vst.msk [vmem:[%s3662_s25 + $0x1e8] sm:$0xff] %vm1899_vm2, %v1858_v53  ;;  %1883 = vst [vmem:[%s3665_s7 + $0x88] sm:$0xff] %v1553_v40  ;;  %v1555_v25 = vadd.f32 %v3656_v12, %v1554_v3 }
 0x2f3   : > { %v1558_v1 = vpop.f32.mrf.mxu0 }
 0x2f4   : > { %1933 = vst [vmem:[%s3662_s25 + $0x110] sm:$0xff] %v1555_v25  ;;  %v1559_v56 = vadd.f32 %v3645_v46, %v1558_v1 }
 0x2f5   : > { %v1560_v2 = vpop.f32.mrf.mxu0 }
 0x2f6   : > { %1884 = vst [vmem:[%s3665_s7 + $0x90] sm:$0xff] %v1559_v56  ;;  %v1561_v55 = vadd.f32 %v3656_v12, %v1560_v2 }
 0x2f7   : > { %v1564_v59 = vpop.f32.mrf.mxu0 }
 0x2f8   : > { %1935 = vst [vmem:[%s3662_s25 + $0x120] sm:$0xff] %v1561_v55  ;;  %v1565_v62 = vadd.f32 %v3645_v46, %v1564_v59 }
 0x2f9   : > { %v1566_v34 = vpop.f32.mrf.mxu0 }
 0x2fa   : > { %1885 = vst [vmem:[%s3665_s7 + $0x98] sm:$0xff] %v1565_v62  ;;  %v1567_v0 = vadd.f32 %v3656_v12, %v1566_v34 }
 0x2fb   : > { %v1570_v5 = vpop.f32.mrf.mxu0 }
 0x2fc   : > { %1937 = vst [vmem:[%s3662_s25 + $0x130] sm:$0xff] %v1567_v0  ;;  %v1571_v50 = vadd.f32 %v3645_v46, %v1570_v5 }
 0x2fd   : > { %v1572_v33 = vpop.f32.mrf.mxu0 }
 0x2fe   : > { %1886 = vst [vmem:[%s3665_s7 + $0xa0] sm:$0xff] %v1571_v50  ;;  %v1573_v35 = vadd.f32 %v3656_v12, %v1572_v33 }
 0x2ff   : > { %v1576_v41 = vpop.f32.mrf.mxu0 }
 0x300   : > { %1939 = vst [vmem:[%s3662_s25 + $0x140] sm:$0xff] %v1573_v35  ;;  %v1577_v47 = vadd.f32 %v3645_v46, %v1576_v41 }
 0x301   : > { %v1578_v6 = vpop.f32.mrf.mxu0 }
 0x302   : > { %1887 = vst [vmem:[%s3665_s7 + $0xa8] sm:$0xff] %v1577_v47  ;;  %v1579_v27 = vadd.f32 %v3656_v12, %v1578_v6 }
 0x303   : > { %v1582_v29 = vpop.f32.mrf.mxu0 }
 0x304   : > { %1941 = vst [vmem:[%s3662_s25 + $0x150] sm:$0xff] %v1579_v27  ;;  %v1583_v7 = vadd.f32 %v3645_v46, %v1582_v29 }
 0x305   : > { %v1584_v48 = vpop.f32.mrf.mxu0 }
 0x306   : > { %1888 = vst [vmem:[%s3665_s7 + $0xb0] sm:$0xff] %v1583_v7  ;;  %v1585_v49 = vadd.f32 %v3656_v12, %v1584_v48 }
 0x307   : > { %v1588_v32 = vpop.f32.mrf.mxu0 }
 0x308   : > { %1943 = vst [vmem:[%s3662_s25 + $0x160] sm:$0xff] %v1585_v49  ;;  %v1589_v18 = vadd.f32 %v3645_v46, %v1588_v32 }
 0x309   : > { %v1590_v24 = vpop.f32.mrf.mxu0 }
 0x30a   : > { %1889 = vst [vmem:[%s3665_s7 + $0xb8] sm:$0xff] %v1589_v18  ;;  %v1591_v61 = vadd.f32 %v3656_v12, %v1590_v24 }
 0x30b   : > { %v1594_v20 = vpop.f32.mrf.mxu0 }
 0x30c   : > { %1945 = vst [vmem:[%s3662_s25 + $0x170] sm:$0xff] %v1591_v61  ;;  %v1595_v15 = vadd.f32 %v3645_v46, %v1594_v20 }
 0x30d   : > { %v1596_v45 = vpop.f32.mrf.mxu0 }
 0x30e   : > { %1890 = vst [vmem:[%s3665_s7 + $0xc0] sm:$0xff] %v1595_v15  ;;  %v1597_v52 = vadd.f32 %v3656_v12, %v1596_v45 }
 0x30f   : > { %v1600_v39 = vpop.f32.mrf.mxu0 }
 0x310   : > { %1947 = vst [vmem:[%s3662_s25 + $0x180] sm:$0xff] %v1597_v52  ;;  %v1601_v37 = vadd.f32 %v3645_v46, %v1600_v39 }
 0x311   : > { %v1602_v57 = vpop.f32.mrf.mxu0 }
 0x312   : > { %1891 = vst [vmem:[%s3665_s7 + $0xc8] sm:$0xff] %v1601_v37  ;;  %v1603_v4 = vadd.f32 %v3656_v12, %v1602_v57 }
 0x313   : > { %v1606_v10 = vpop.f32.mrf.mxu0 }
 0x314   : > { %1949 = vst [vmem:[%s3662_s25 + $0x190] sm:$0xff] %v1603_v4  ;;  %v1607_v36 = vadd.f32 %v3645_v46, %v1606_v10 }
 0x315   : > { %v1608_v16 = vpop.f32.mrf.mxu0 }
 0x316   : > { %1892 = vst [vmem:[%s3665_s7 + $0xd0] sm:$0xff] %v1607_v36  ;;  %v1609_v44 = vadd.f32 %v3656_v12, %v1608_v16 }
 0x317   : > { %v1612_v38 = vpop.f32.mrf.mxu0 }
 0x318   : > { %1951 = vst [vmem:[%s3662_s25 + $0x1a0] sm:$0xff] %v1609_v44  ;;  %v1613_v26 = vadd.f32 %v3645_v46, %v1612_v38 }
 0x319   : > { %v1614_v13 = vpop.f32.mrf.mxu0 }
 0x31a   : > { %1893 = vst [vmem:[%s3665_s7 + $0xd8] sm:$0xff] %v1613_v26  ;;  %v1615_v8 = vadd.f32 %v3656_v12, %v1614_v13 }
 0x31b   : > { %v1618_v17 = vpop.f32.mrf.mxu0 }
 0x31c   : > { %1953 = vst [vmem:[%s3662_s25 + $0x1b0] sm:$0xff] %v1615_v8  ;;  %v1619_v58 = vadd.f32 %v3645_v46, %v1618_v17 }
 0x31d   : > { %v1620_v9 = vpop.f32.mrf.mxu0 }
 0x31e   : > { %1894 = vst [vmem:[%s3665_s7 + $0xe0] sm:$0xff] %v1619_v58  ;;  %v1621_v60 = vadd.f32 %v3656_v12, %v1620_v9 }
 0x31f   : > { %v1624_v28 = vpop.f32.mrf.mxu0 }
 0x320   : > { %1955 = vst [vmem:[%s3662_s25 + $0x1c0] sm:$0xff] %v1621_v60  ;;  %v1625_v19 = vadd.f32 %v3645_v46, %v1624_v28 }
 0x321   : > { %v1626_v14 = vpop.f32.mrf.mxu0 }
 0x322   : > { %1895 = vst [vmem:[%s3665_s7 + $0xe8] sm:$0xff] %v1625_v19  ;;  %v1627_v30 = vadd.f32 %v3656_v12, %v1626_v14 }
 0x323   : > { %v1630_v42 = vpop.f32.mrf.mxu0 }
 0x324   : > { %1957 = vst [vmem:[%s3662_s25 + $0x1d0] sm:$0xff] %v1627_v30  ;;  %v1631_v43 = vadd.f32 %v3645_v46, %v1630_v42 }
 0x325   : > { %v1632_v54 = vpop.f32.mrf.mxu0 }
 0x326   : > { %1896 = vst [vmem:[%s3665_s7 + $0xf0] sm:$0xff] %v1631_v43  ;;  %v1633_v21 = vadd.f32 %v3656_v12, %v1632_v54 }
 0x327   : > { %v1636_v11 = vpop.f32.mrf.mxu0 }
 0x328   : > { %1959 = vst [vmem:[%s3662_s25 + $0x1e0] sm:$0xff] %v1633_v21  ;;  %v1637_v23 = vadd.f32 %v3645_v46, %v1636_v11 }
 0x329   : > { %v1638_v31 = vpop.f32.mrf.mxu0 }
 0x32a   : > { %1897 = vst [vmem:[%s3665_s7 + $0xf8] sm:$0xff] %v1637_v23  ;;  %v1639_v63 = vadd.f32 %v3656_v12, %v1638_v31 }
 0x32b   : > { %2789 = shalt.err (!%p2786_p3)
}
 0x32c   : > { %s2790_s8 = scalar_lea.hbm %s3889_s10, 4096  ;;  %s2794_s17 = scalar_lea.hbm %s3944_s4, 8192 }
 0x32d   : > { %p2791_p4 = scmp.ne.s32.totalorder %s3889_s10, %s2790_s8  ;;  %p2795_p9 = scmp.lt.s32.totalorder %s3889_s10, %s3944_s4 }
 0x32e   : > { %p2796_p10 = scmp.lt.s32.totalorder %s2794_s17, %s2790_s8 }
 0x32f   : > { %p2792_p7 = pnand %p2791_p4, %p2910_p5 }
 0x330   : > { %p2797_p11 = por %p2796_p10, %p2795_p9 }
 0x331   : > { %p2793_p8 = pneg %p2792_p7 }
 0x333   : > { %p2798_p12 = pnand %p2797_p11, %p2793_p8 }
 0x335   : > { %2801 = shalt.err (!%p2798_p12)
}
 0x336   : > { %s2840_s26 = smov 128   ;;  %s2841_s6 = smov 8   ;;  %1961 = vst [vmem:[%s3662_s25 + $0x1f0] sm:$0xff] %v1639_v63 }
 0x337   : > { %2478 = dma.vmem_to_hbm [thread:$0]  (%p2910_p5), %s3891_s30, 4096, %s3889_s10, %s3899_s22, %s2840_s26, %s2840_s26, %s2841_s6  }
 0x338 PF: > { %p2484_p13 = scmp.ge.s32.totalorder %s2836_s21, 2  ;;  %s2002_s9 = sand.u32 1, %s2824_s18  }
 0x339   : > { %s2003_s11 = scalar_lea.sflag [#allocation3], %s2002_s9 }
 0x33a   : > { %p2481_p0 = pnand %p2484_p13, %p2914_p6 }
 0x33c   : > { %p2482_p1 = pneg %p2481_p0 }
 0x33e   : > { %2819 = dma.done.wait (%p2482_p1), %s2003_s11, 4096  }
 0x33f   : > { %2821 = vsyncadd (%p2482_p1), %s2003_s11, 4294963200  ;;  %p16_p2 = scmp.ge.s32.totalorder %s2897_s24, 4   ;;  %s3948_s18 = smov %s2828_s19 }
 0x340   : > { %s3949_s19 = smov %s2832_s20  ;;  %s3950_s20 = smov %s2908_s27 }
 0x341   : > { %s3951_s21 = smov %s2897_s24  ;;  %18 = sbr.rel (!%p16_p2) target bundleno = 3 (0x3), region = 83 }
 0x346   :  { %2017 = vsyncpa [#allocation3], 1 }
 0x347   :  { %2019 = vsyncpa [#allocation3 + $0x1], 1 }

</bundles_post_ra>
